<compile_context>
chip_gen: v5e
topology: v5e:2x2
jax: 0.10.0
libtpu: 0.0.40
codegen_flags: <defaults>
</compile_context>

<pallas_src>
import functools

import jax
import jax.numpy as jnp
from jax.experimental import pallas as pl
from jax.experimental.pallas import tpu as pltpu

LANE = 128


def _round_up(n, m):
    return (n + m - 1) // m * m


# ----------------------------------------------------------------------------- kernel
def _fused_sequence_kernel(x_ref, *refs, block_meta, compute_dtype,
                           use_layer_norm, eps):
    """All residual blocks fused; the activation tile stays on-chip across blocks.

    refs = (w_hr_0, b_hr_0, w_p_0, b_p_0, g_0, beta_0, w_hr_1, ..., o_ref)
    block_meta[i] = (hid_pad, out_pad, out_size)  -- static Python ints.
    """
    o_ref = refs[-1]
    params = refs[:-1]

    x = x_ref[...].astype(jnp.float32)           # activation carried in f32

    # n_blocks is small in TIDE -> Python-unrolled loop (static shapes & slices).
    for i, (hid_pad, out_pad, out_size) in enumerate(block_meta):
        w_hr, b_hr, w_p, b_p, g, beta = params[6 * i:6 * i + 6]

        # One MXU pass for the two matmuls that share x:  x @ [Wh | Wr]
        xw = x.astype(compute_dtype)
        hr = jnp.dot(xw, w_hr[...], preferred_element_type=jnp.float32) + b_hr[...]
        h = jnp.maximum(hr[:, :hid_pad], 0.0)    # hidden path (ReLU); lane-aligned slice
        residual = hr[:, hid_pad:]               # residual path

        z = (jnp.dot(h.astype(compute_dtype), w_p[...],
                     preferred_element_type=jnp.float32)
             + b_p[...] + residual)
        # TODO(synk): nn.Dropout is identity in eval/inference mode; no RNG masking.

        if use_layer_norm:
            # Mask-free LayerNorm: padded lanes of z are exactly zero and gamma/beta
            # are zero-padded, so padded lanes never contaminate the statistics and
            # come out exactly zero again for the next block.
            inv_n = 1.0 / out_size               # divide by the TRUE output width
            mean = jnp.sum(z, axis=-1, keepdims=True) * inv_n
            zc = z - mean
            # sum(zc * z) == sum(zc**2) in exact math; padded lanes contribute 0.
            var = jnp.sum(zc * z, axis=-1, keepdims=True) * inv_n
            z = zc * jax.lax.rsqrt(var + eps) * g[...] + beta[...]

        x = z

    o_ref[...] = x.astype(o_ref.dtype)


# ---------------------------------------------------------------------- param packing
def pack_block_params(block_params, weight_dtype=jnp.float32):
    """Zero-pad each block's weights to per-dimension lane multiples (no common-F
    over-padding) and return a flat param list plus static per-block metadata."""
    def pad2(a, r, c):
        return jnp.pad(a, ((0, r - a.shape[0]), (0, c - a.shape[1])))

    flat, meta = [], []
    for (wh, bh, wp, bp, wr, br, gamma, beta) in block_params:
        in_size, hid = wh.shape
        out_size = wp.shape[1]
        k_pad = _round_up(in_size, LANE)
        h_pad = _round_up(hid, LANE)
        o_pad = _round_up(out_size, LANE)
        flat += [
            jnp.concatenate([pad2(wh, k_pad, h_pad), pad2(wr, k_pad, o_pad)],
                            axis=1).astype(weight_dtype),            # [Wh | Wr]
            jnp.concatenate([pad2(bh, 1, h_pad), pad2(br, 1, o_pad)],
                            axis=1).astype(jnp.float32),             # [bh | br]
            pad2(wp, h_pad, o_pad).astype(weight_dtype),
            pad2(bp, 1, o_pad).astype(jnp.float32),
            pad2(gamma, 1, o_pad).astype(jnp.float32),
            pad2(beta, 1, o_pad).astype(jnp.float32),
        ]
        meta.append((h_pad, o_pad, out_size))
    return flat, tuple(meta)


# --------------------------------------------------------------------------- wrapper
def residual_sequence_block(x, block_params, *, use_layer_norm=True, eps=1e-5,
                            weight_dtype=jnp.bfloat16, batch_tile=512):
    """Fused forward of the whole ResidualSequenceBlock.  x: [B, input_size].

    weight_dtype=jnp.bfloat16 is the fast inference path (~2x MXU, half the weight
    VMEM/HBM); pass jnp.float32 when bit-tight accuracy is required.
    """
    B, in_size = x.shape
    n_blocks = len(block_params)
    out_last = block_params[-1][2].shape[1]

    flat_params, block_meta = pack_block_params(block_params, weight_dtype)
    k_pad0 = _round_up(in_size, LANE)
    out_pad_last = block_meta[-1][1]

    # -------------------------------------------------------------- VMEM budgeting
    weight_bytes = sum(int(a.size) * a.dtype.itemsize for a in flat_params)
    widest = max([k_pad0] + [hp + op for hp, op, _ in block_meta])
    x_bytes = x.dtype.itemsize

    def vmem_need(tb):
        io_buf = 2 * tb * (k_pad0 + out_pad_last) * x_bytes   # double-buffered I/O tiles
        inter = 6 * tb * widest * 4                           # f32 intermediates (generous)
        return weight_bytes + io_buf + inter + (2 << 20)

    try:
        vmem_cap = int(pltpu.get_tpu_info().vmem_capacity_bytes)
    except Exception:                                         # keep portable if query fails
        vmem_cap = 64 << 20                                   # v7x-safe fallback
    cap = int(vmem_cap * 0.9)

    # Batch tile: sublane-aligned, fits the per-core VMEM budget, and (when the batch
    # allows it) keeps >= 2 grid steps so both v7x TensorCores get work.
    sub = 16 if x.dtype == jnp.bfloat16 else 8
    TB = max(min(batch_tile, _round_up(B, sub)), sub)
    TB = _round_up(TB, sub)
    while vmem_need(TB) > cap and TB > sub:
        TB = max(_round_up(TB // 2, sub), sub)
    B_pad = _round_up(B, TB)
    if B_pad // TB < 2 and TB > sub:          # v7x: give both TensorCores a grid step
        TB = max(_round_up(TB // 2, sub), sub)
        B_pad = _round_up(B, TB)
    # TODO(synk): if weight_bytes alone exceeds the VMEM cap (huge n_blocks*F), stream
    # per-block weights with memory_space=pl.ANY + manual make_async_copy double-buffering.

    vmem_limit = int(min(cap, max(vmem_need(TB), 32 << 20)))

    x_pad = jnp.pad(x, ((0, B_pad - B), (0, k_pad0 - in_size)))

    kernel = functools.partial(
        _fused_sequence_kernel, block_meta=block_meta,
        compute_dtype=weight_dtype, use_layer_norm=use_layer_norm, eps=eps)

    # Advisory cost estimate (true padded dims per block).
    k_pads = [k_pad0] + [op for _, op, _ in block_meta[:-1]]
    flops = sum(2 * B_pad * (kp * (hp + op) + hp * op)
                for kp, (hp, op, _) in zip(k_pads, block_meta))
    cost = pl.CostEstimate(
        flops=int(flops),
        transcendentals=int(B_pad * n_blocks) if use_layer_norm else 0,
        bytes_accessed=int(x_pad.size * x_bytes
                           + B_pad * out_pad_last * x_bytes + weight_bytes))

    def _const_spec(a, single_buffer):
        ndim = a.ndim

        def idx(b):
            return (0,) * ndim

        if single_buffer:
            # Index never changes -> single-buffer: halves resident weight VMEM.
            return pl.BlockSpec(a.shape, idx, pipeline_mode=pl.Buffered(1))
        return pl.BlockSpec(a.shape, idx)

    def _call(single_buffer):
        in_specs = ([pl.BlockSpec((TB, k_pad0), lambda b: (b, 0))]
                    + [_const_spec(a, single_buffer) for a in flat_params])
        out = pl.pallas_call(
            kernel,
            out_shape=jax.ShapeDtypeStruct((B_pad, out_pad_last), x.dtype),
            grid=(B_pad // TB,),
            in_specs=in_specs,
            out_specs=pl.BlockSpec((TB, out_pad_last), lambda b: (b, 0)),
            compiler_params=pltpu.CompilerParams(
                dimension_semantics=("parallel",),
                vmem_limit_bytes=vmem_limit),
            cost_estimate=cost,
        )(x_pad, *flat_params)
        return jax.block_until_ready(out)

    try:
        out = _call(single_buffer=True)
    except Exception:
        # Fallback for runtimes without BlockSpec pipeline_mode support.
        out = _call(single_buffer=False)

    return out[:B, :out_last]


# ------------------------------------------------------------------------------ init
def init_block_params(key, input_size, hidden_size, output_size, dtype=jnp.float32):
    """Deterministic PyTorch-Linear-style init (uniform +- 1/sqrt(fan_in))."""
    keys = jax.random.split(key, 6)

    def linear(kw, kb, fan_in, fan_out):
        bound = 1.0 / jnp.sqrt(fan_in)
        w = jax.random.uniform(kw, (fan_in, fan_out), dtype, -bound, bound)
        b = jax.random.uniform(kb, (1, fan_out), dtype, -bound, bound)
        return w, b

    wh, bh = linear(keys[0], keys[1], input_size, hidden_size)   # hidden
    wp, bp = linear(keys[2], keys[3], hidden_size, output_size)  # proj
    wr, br = linear(keys[4], keys[5], input_size, output_size)   # proj_residual
    gamma = jnp.ones((1, output_size), dtype)                    # LayerNorm weight
    beta = jnp.zeros((1, output_size), dtype)                    # LayerNorm bias
    return (wh, bh, wp, bp, wr, br, gamma, beta)


def build_residual_sequence(key, n_blocks, hidden_size, input_size, output_size,
                            dtype=jnp.float32):
    keys = jax.random.split(key, n_blocks)
    if n_blocks == 1:
        return [init_block_params(keys[0], input_size, hidden_size, output_size, dtype)]
    blocks = [init_block_params(keys[0], input_size, hidden_size, hidden_size, dtype)]
    for i in range(n_blocks - 2):
        blocks.append(init_block_params(keys[i + 1], hidden_size, hidden_size,
                                        hidden_size, dtype))
    blocks.append(init_block_params(keys[-1], hidden_size, hidden_size,
                                    output_size, dtype))
    return blocks


# ------------------------------------------------------------------------- reference
def _reference(x, block_params, use_layer_norm=True, eps=1e-5):
    for (wh, bh, wp, bp, wr, br, gamma, beta) in block_params:
        residual = x @ wr + br
        h = jnp.maximum(x @ wh + bh, 0.0)
        y = h @ wp + bp
        z = y + residual
        if use_layer_norm:
            mean = jnp.mean(z, axis=-1, keepdims=True)
            var = jnp.mean((z - mean) ** 2, axis=-1, keepdims=True)
            z = (z - mean) / jnp.sqrt(var + eps) * gamma + beta
        x = z
    return x


if __name__ == "__main__":
    # ResidualSequenceBlock(n_blocks=3, hidden_size=32, input_size=16,
    #                       output_size=24, p=0.1, layer_norm=True)
    n_blocks, hidden_size, input_size, output_size = 3, 32, 16, 24
    batch = 8

    key = jax.random.PRNGKey(0)
    k_x, k_p = jax.random.split(key)
    x = jax.random.normal(k_x, (batch, input_size), jnp.float32)

    block_params = build_residual_sequence(
        k_p, n_blocks, hidden_size, input_size, output_size, jnp.float32)

    # f32 weight path: bit-tight, used for the reference tolerance check.
    out = residual_sequence_block(x, block_params, use_layer_norm=True,
                                  weight_dtype=jnp.float32)
    out = jax.block_until_ready(out)

    ref = _reference(x, block_params, use_layer_norm=True)
    assert out.shape == (batch, output_size)
    assert jnp.allclose(out, ref, atol=1e-4, rtol=1e-4), "mismatch vs reference"

    # bf16 weight path: production inference (2x MXU, half weight VMEM/HBM traffic).
    out_bf16 = residual_sequence_block(x, block_params, use_layer_norm=True,
                                       weight_dtype=jnp.bfloat16)
    out_bf16 = jax.block_until_ready(out_bf16)
    assert out_bf16.shape == (batch, output_size)

    print("KERNEL_OK")
</pallas_src>

<mosaic_0001>
module attributes {stable_mosaic.version = 11 : i64} {
  func.func @_fused_sequence_kernel(%arg0: i32, %arg1: memref<8x128xf32, #tpu.memory_space<vmem>>, %arg2: memref<128x256xf32, #tpu.memory_space<vmem>>, %arg3: memref<1x256xf32, #tpu.memory_space<vmem>>, %arg4: memref<128x128xf32, #tpu.memory_space<vmem>>, %arg5: memref<1x128xf32, #tpu.memory_space<vmem>>, %arg6: memref<1x128xf32, #tpu.memory_space<vmem>>, %arg7: memref<1x128xf32, #tpu.memory_space<vmem>>, %arg8: memref<128x256xf32, #tpu.memory_space<vmem>>, %arg9: memref<1x256xf32, #tpu.memory_space<vmem>>, %arg10: memref<128x128xf32, #tpu.memory_space<vmem>>, %arg11: memref<1x128xf32, #tpu.memory_space<vmem>>, %arg12: memref<1x128xf32, #tpu.memory_space<vmem>>, %arg13: memref<1x128xf32, #tpu.memory_space<vmem>>, %arg14: memref<128x256xf32, #tpu.memory_space<vmem>>, %arg15: memref<1x256xf32, #tpu.memory_space<vmem>>, %arg16: memref<128x128xf32, #tpu.memory_space<vmem>>, %arg17: memref<1x128xf32, #tpu.memory_space<vmem>>, %arg18: memref<1x128xf32, #tpu.memory_space<vmem>>, %arg19: memref<1x128xf32, #tpu.memory_space<vmem>>, %arg20: memref<8x128xf32, #tpu.memory_space<vmem>>) attributes {dimension_semantics = [#tpu.dimension_semantics<parallel>], iteration_bounds = array<i64: 1>, scalar_prefetch = 0 : i64, scratch_operands = 0 : i64, tpu.core_type = #tpu.core_type<tc>, window_params = [{transform_indices = @transform_0, window_bounds = array<i64: 8, 128>}, {pipeline_mode = #tpu.pipeline_mode<synchronous>, transform_indices = @transform_1, window_bounds = array<i64: 128, 256>}, {pipeline_mode = #tpu.pipeline_mode<synchronous>, transform_indices = @transform_2, window_bounds = array<i64: 1, 256>}, {pipeline_mode = #tpu.pipeline_mode<synchronous>, transform_indices = @transform_3, window_bounds = array<i64: 128, 128>}, {pipeline_mode = #tpu.pipeline_mode<synchronous>, transform_indices = @transform_4, window_bounds = array<i64: 1, 128>}, {pipeline_mode = #tpu.pipeline_mode<synchronous>, transform_indices = @transform_5, window_bounds = array<i64: 1, 128>}, {pipeline_mode = #tpu.pipeline_mode<synchronous>, transform_indices = @transform_6, window_bounds = array<i64: 1, 128>}, {pipeline_mode = #tpu.pipeline_mode<synchronous>, transform_indices = @transform_7, window_bounds = array<i64: 128, 256>}, {pipeline_mode = #tpu.pipeline_mode<synchronous>, transform_indices = @transform_8, window_bounds = array<i64: 1, 256>}, {pipeline_mode = #tpu.pipeline_mode<synchronous>, transform_indices = @transform_9, window_bounds = array<i64: 128, 128>}, {pipeline_mode = #tpu.pipeline_mode<synchronous>, transform_indices = @transform_10, window_bounds = array<i64: 1, 128>}, {pipeline_mode = #tpu.pipeline_mode<synchronous>, transform_indices = @transform_11, window_bounds = array<i64: 1, 128>}, {pipeline_mode = #tpu.pipeline_mode<synchronous>, transform_indices = @transform_12, window_bounds = array<i64: 1, 128>}, {pipeline_mode = #tpu.pipeline_mode<synchronous>, transform_indices = @transform_13, window_bounds = array<i64: 128, 256>}, {pipeline_mode = #tpu.pipeline_mode<synchronous>, transform_indices = @transform_14, window_bounds = array<i64: 1, 256>}, {pipeline_mode = #tpu.pipeline_mode<synchronous>, transform_indices = @transform_15, window_bounds = array<i64: 128, 128>}, {pipeline_mode = #tpu.pipeline_mode<synchronous>, transform_indices = @transform_16, window_bounds = array<i64: 1, 128>}, {pipeline_mode = #tpu.pipeline_mode<synchronous>, transform_indices = @transform_17, window_bounds = array<i64: 1, 128>}, {pipeline_mode = #tpu.pipeline_mode<synchronous>, transform_indices = @transform_18, window_bounds = array<i64: 1, 128>}, {transform_indices = @transform_19, window_bounds = array<i64: 8, 128>}]} {
    %c0 = arith.constant 0 : index
    %c0_0 = arith.constant 0 : index
    %0 = vector.load %arg1[%c0, %c0_0] : memref<8x128xf32, #tpu.memory_space<vmem>>, vector<8x128xf32>
    %c0_1 = arith.constant 0 : index
    %c0_2 = arith.constant 0 : index
    %1 = vector.load %arg2[%c0_1, %c0_2] : memref<128x256xf32, #tpu.memory_space<vmem>>, vector<128x256xf32>
    %cst = arith.constant dense<0.000000e+00> : vector<8x256xf32>
    %2 = tpu.matmul %0, %1, %cst {dimension_numbers = #tpu.dot_dimension_numbers<[1], [0], [0], [1], [0, 0, 1, 1], [], []>} : vector<8x128xf32>, vector<128x256xf32>, vector<8x256xf32> -> vector<8x256xf32>
    %c0_3 = arith.constant 0 : index
    %c0_4 = arith.constant 0 : index
    %3 = vector.load %arg3[%c0_3, %c0_4] : memref<1x256xf32, #tpu.memory_space<vmem>>, vector<1x256xf32>
    %4 = vector.broadcast %3 : vector<1x256xf32> to vector<8x256xf32>
    %5 = arith.addf %2, %4 : vector<8x256xf32>
    %6 = vector.extract_strided_slice %5 {offsets = [0, 0], sizes = [8, 128], strides = [1, 1]} : vector<8x256xf32> to vector<8x128xf32>
    %cst_5 = arith.constant 0.000000e+00 : f32
    %7 = vector.broadcast %cst_5 : f32 to vector<8x128xf32>
    %8 = arith.maximumf %6, %7 : vector<8x128xf32>
    %9 = vector.extract_strided_slice %5 {offsets = [0, 128], sizes = [8, 128], strides = [1, 1]} : vector<8x256xf32> to vector<8x128xf32>
    %c0_6 = arith.constant 0 : index
    %c0_7 = arith.constant 0 : index
    %10 = vector.load %arg4[%c0_6, %c0_7] : memref<128x128xf32, #tpu.memory_space<vmem>>, vector<128x128xf32>
    %cst_8 = arith.constant dense<0.000000e+00> : vector<8x128xf32>
    %11 = tpu.matmul %8, %10, %cst_8 {dimension_numbers = #tpu.dot_dimension_numbers<[1], [0], [0], [1], [0, 0, 1, 1], [], []>} : vector<8x128xf32>, vector<128x128xf32>, vector<8x128xf32> -> vector<8x128xf32>
    %c0_9 = arith.constant 0 : index
    %c0_10 = arith.constant 0 : index
    %12 = vector.load %arg5[%c0_9, %c0_10] : memref<1x128xf32, #tpu.memory_space<vmem>>, vector<1x128xf32>
    %13 = vector.broadcast %12 : vector<1x128xf32> to vector<8x128xf32>
    %14 = arith.addf %11, %13 : vector<8x128xf32>
    %15 = arith.addf %14, %9 : vector<8x128xf32>
    %cst_11 = arith.constant dense<0.000000e+00> : vector<8xf32>
    %16 = vector.multi_reduction <add>, %15, %cst_11 [1] : vector<8x128xf32> to vector<8xf32>
    %17 = vector.shape_cast %16 : vector<8xf32> to vector<8x1xf32>
    %cst_12 = arith.constant 3.125000e-02 : f32
    %18 = vector.broadcast %cst_12 : f32 to vector<8x1xf32>
    %19 = arith.mulf %17, %18 : vector<8x1xf32>
    %20 = vector.broadcast %19 : vector<8x1xf32> to vector<8x128xf32>
    %21 = arith.subf %15, %20 : vector<8x128xf32>
    %22 = arith.mulf %21, %15 : vector<8x128xf32>
    %cst_13 = arith.constant dense<0.000000e+00> : vector<8xf32>
    %23 = vector.multi_reduction <add>, %22, %cst_13 [1] : vector<8x128xf32> to vector<8xf32>
    %24 = vector.shape_cast %23 : vector<8xf32> to vector<8x1xf32>
    %cst_14 = arith.constant 3.125000e-02 : f32
    %25 = vector.broadcast %cst_14 : f32 to vector<8x1xf32>
    %26 = arith.mulf %24, %25 : vector<8x1xf32>
    %cst_15 = arith.constant 9.99999974E-6 : f32
    %27 = vector.broadcast %cst_15 : f32 to vector<8x1xf32>
    %28 = arith.addf %26, %27 : vector<8x1xf32>
    %29 = math.rsqrt %28 : vector<8x1xf32>
    %30 = vector.broadcast %29 : vector<8x1xf32> to vector<8x128xf32>
    %31 = arith.mulf %21, %30 : vector<8x128xf32>
    %c0_16 = arith.constant 0 : index
    %c0_17 = arith.constant 0 : index
    %32 = vector.load %arg6[%c0_16, %c0_17] : memref<1x128xf32, #tpu.memory_space<vmem>>, vector<1x128xf32>
    %33 = vector.broadcast %32 : vector<1x128xf32> to vector<8x128xf32>
    %34 = arith.mulf %31, %33 : vector<8x128xf32>
    %c0_18 = arith.constant 0 : index
    %c0_19 = arith.constant 0 : index
    %35 = vector.load %arg7[%c0_18, %c0_19] : memref<1x128xf32, #tpu.memory_space<vmem>>, vector<1x128xf32>
    %36 = vector.broadcast %35 : vector<1x128xf32> to vector<8x128xf32>
    %37 = arith.addf %34, %36 : vector<8x128xf32>
    %c0_20 = arith.constant 0 : index
    %c0_21 = arith.constant 0 : index
    %38 = vector.load %arg8[%c0_20, %c0_21] : memref<128x256xf32, #tpu.memory_space<vmem>>, vector<128x256xf32>
    %cst_22 = arith.constant dense<0.000000e+00> : vector<8x256xf32>
    %39 = tpu.matmul %37, %38, %cst_22 {dimension_numbers = #tpu.dot_dimension_numbers<[1], [0], [0], [1], [0, 0, 1, 1], [], []>} : vector<8x128xf32>, vector<128x256xf32>, vector<8x256xf32> -> vector<8x256xf32>
    %c0_23 = arith.constant 0 : index
    %c0_24 = arith.constant 0 : index
    %40 = vector.load %arg9[%c0_23, %c0_24] : memref<1x256xf32, #tpu.memory_space<vmem>>, vector<1x256xf32>
    %41 = vector.broadcast %40 : vector<1x256xf32> to vector<8x256xf32>
    %42 = arith.addf %39, %41 : vector<8x256xf32>
    %43 = vector.extract_strided_slice %42 {offsets = [0, 0], sizes = [8, 128], strides = [1, 1]} : vector<8x256xf32> to vector<8x128xf32>
    %cst_25 = arith.constant 0.000000e+00 : f32
    %44 = vector.broadcast %cst_25 : f32 to vector<8x128xf32>
    %45 = arith.maximumf %43, %44 : vector<8x128xf32>
    %46 = vector.extract_strided_slice %42 {offsets = [0, 128], sizes = [8, 128], strides = [1, 1]} : vector<8x256xf32> to vector<8x128xf32>
    %c0_26 = arith.constant 0 : index
    %c0_27 = arith.constant 0 : index
    %47 = vector.load %arg10[%c0_26, %c0_27] : memref<128x128xf32, #tpu.memory_space<vmem>>, vector<128x128xf32>
    %cst_28 = arith.constant dense<0.000000e+00> : vector<8x128xf32>
    %48 = tpu.matmul %45, %47, %cst_28 {dimension_numbers = #tpu.dot_dimension_numbers<[1], [0], [0], [1], [0, 0, 1, 1], [], []>} : vector<8x128xf32>, vector<128x128xf32>, vector<8x128xf32> -> vector<8x128xf32>
    %c0_29 = arith.constant 0 : index
    %c0_30 = arith.constant 0 : index
    %49 = vector.load %arg11[%c0_29, %c0_30] : memref<1x128xf32, #tpu.memory_space<vmem>>, vector<1x128xf32>
    %50 = vector.broadcast %49 : vector<1x128xf32> to vector<8x128xf32>
    %51 = arith.addf %48, %50 : vector<8x128xf32>
    %52 = arith.addf %51, %46 : vector<8x128xf32>
    %cst_31 = arith.constant dense<0.000000e+00> : vector<8xf32>
    %53 = vector.multi_reduction <add>, %52, %cst_31 [1] : vector<8x128xf32> to vector<8xf32>
    %54 = vector.shape_cast %53 : vector<8xf32> to vector<8x1xf32>
    %cst_32 = arith.constant 3.125000e-02 : f32
    %55 = vector.broadcast %cst_32 : f32 to vector<8x1xf32>
    %56 = arith.mulf %54, %55 : vector<8x1xf32>
    %57 = vector.broadcast %56 : vector<8x1xf32> to vector<8x128xf32>
    %58 = arith.subf %52, %57 : vector<8x128xf32>
    %59 = arith.mulf %58, %52 : vector<8x128xf32>
    %cst_33 = arith.constant dense<0.000000e+00> : vector<8xf32>
    %60 = vector.multi_reduction <add>, %59, %cst_33 [1] : vector<8x128xf32> to vector<8xf32>
    %61 = vector.shape_cast %60 : vector<8xf32> to vector<8x1xf32>
    %cst_34 = arith.constant 3.125000e-02 : f32
    %62 = vector.broadcast %cst_34 : f32 to vector<8x1xf32>
    %63 = arith.mulf %61, %62 : vector<8x1xf32>
    %cst_35 = arith.constant 9.99999974E-6 : f32
    %64 = vector.broadcast %cst_35 : f32 to vector<8x1xf32>
    %65 = arith.addf %63, %64 : vector<8x1xf32>
    %66 = math.rsqrt %65 : vector<8x1xf32>
    %67 = vector.broadcast %66 : vector<8x1xf32> to vector<8x128xf32>
    %68 = arith.mulf %58, %67 : vector<8x128xf32>
    %c0_36 = arith.constant 0 : index
    %c0_37 = arith.constant 0 : index
    %69 = vector.load %arg12[%c0_36, %c0_37] : memref<1x128xf32, #tpu.memory_space<vmem>>, vector<1x128xf32>
    %70 = vector.broadcast %69 : vector<1x128xf32> to vector<8x128xf32>
    %71 = arith.mulf %68, %70 : vector<8x128xf32>
    %c0_38 = arith.constant 0 : index
    %c0_39 = arith.constant 0 : index
    %72 = vector.load %arg13[%c0_38, %c0_39] : memref<1x128xf32, #tpu.memory_space<vmem>>, vector<1x128xf32>
    %73 = vector.broadcast %72 : vector<1x128xf32> to vector<8x128xf32>
    %74 = arith.addf %71, %73 : vector<8x128xf32>
    %c0_40 = arith.constant 0 : index
    %c0_41 = arith.constant 0 : index
    %75 = vector.load %arg14[%c0_40, %c0_41] : memref<128x256xf32, #tpu.memory_space<vmem>>, vector<128x256xf32>
    %cst_42 = arith.constant dense<0.000000e+00> : vector<8x256xf32>
    %76 = tpu.matmul %74, %75, %cst_42 {dimension_numbers = #tpu.dot_dimension_numbers<[1], [0], [0], [1], [0, 0, 1, 1], [], []>} : vector<8x128xf32>, vector<128x256xf32>, vector<8x256xf32> -> vector<8x256xf32>
    %c0_43 = arith.constant 0 : index
    %c0_44 = arith.constant 0 : index
    %77 = vector.load %arg15[%c0_43, %c0_44] : memref<1x256xf32, #tpu.memory_space<vmem>>, vector<1x256xf32>
    %78 = vector.broadcast %77 : vector<1x256xf32> to vector<8x256xf32>
    %79 = arith.addf %76, %78 : vector<8x256xf32>
    %80 = vector.extract_strided_slice %79 {offsets = [0, 0], sizes = [8, 128], strides = [1, 1]} : vector<8x256xf32> to vector<8x128xf32>
    %cst_45 = arith.constant 0.000000e+00 : f32
    %81 = vector.broadcast %cst_45 : f32 to vector<8x128xf32>
    %82 = arith.maximumf %80, %81 : vector<8x128xf32>
    %83 = vector.extract_strided_slice %79 {offsets = [0, 128], sizes = [8, 128], strides = [1, 1]} : vector<8x256xf32> to vector<8x128xf32>
    %c0_46 = arith.constant 0 : index
    %c0_47 = arith.constant 0 : index
    %84 = vector.load %arg16[%c0_46, %c0_47] : memref<128x128xf32, #tpu.memory_space<vmem>>, vector<128x128xf32>
    %cst_48 = arith.constant dense<0.000000e+00> : vector<8x128xf32>
    %85 = tpu.matmul %82, %84, %cst_48 {dimension_numbers = #tpu.dot_dimension_numbers<[1], [0], [0], [1], [0, 0, 1, 1], [], []>} : vector<8x128xf32>, vector<128x128xf32>, vector<8x128xf32> -> vector<8x128xf32>
    %c0_49 = arith.constant 0 : index
    %c0_50 = arith.constant 0 : index
    %86 = vector.load %arg17[%c0_49, %c0_50] : memref<1x128xf32, #tpu.memory_space<vmem>>, vector<1x128xf32>
    %87 = vector.broadcast %86 : vector<1x128xf32> to vector<8x128xf32>
    %88 = arith.addf %85, %87 : vector<8x128xf32>
    %89 = arith.addf %88, %83 : vector<8x128xf32>
    %cst_51 = arith.constant dense<0.000000e+00> : vector<8xf32>
    %90 = vector.multi_reduction <add>, %89, %cst_51 [1] : vector<8x128xf32> to vector<8xf32>
    %91 = vector.shape_cast %90 : vector<8xf32> to vector<8x1xf32>
    %cst_52 = arith.constant 0.0416666679 : f32
    %92 = vector.broadcast %cst_52 : f32 to vector<8x1xf32>
    %93 = arith.mulf %91, %92 : vector<8x1xf32>
    %94 = vector.broadcast %93 : vector<8x1xf32> to vector<8x128xf32>
    %95 = arith.subf %89, %94 : vector<8x128xf32>
    %96 = arith.mulf %95, %89 : vector<8x128xf32>
    %cst_53 = arith.constant dense<0.000000e+00> : vector<8xf32>
    %97 = vector.multi_reduction <add>, %96, %cst_53 [1] : vector<8x128xf32> to vector<8xf32>
    %98 = vector.shape_cast %97 : vector<8xf32> to vector<8x1xf32>
    %cst_54 = arith.constant 0.0416666679 : f32
    %99 = vector.broadcast %cst_54 : f32 to vector<8x1xf32>
    %100 = arith.mulf %98, %99 : vector<8x1xf32>
    %cst_55 = arith.constant 9.99999974E-6 : f32
    %101 = vector.broadcast %cst_55 : f32 to vector<8x1xf32>
    %102 = arith.addf %100, %101 : vector<8x1xf32>
    %103 = math.rsqrt %102 : vector<8x1xf32>
    %104 = vector.broadcast %103 : vector<8x1xf32> to vector<8x128xf32>
    %105 = arith.mulf %95, %104 : vector<8x128xf32>
    %c0_56 = arith.constant 0 : index
    %c0_57 = arith.constant 0 : index
    %106 = vector.load %arg18[%c0_56, %c0_57] : memref<1x128xf32, #tpu.memory_space<vmem>>, vector<1x128xf32>
    %107 = vector.broadcast %106 : vector<1x128xf32> to vector<8x128xf32>
    %108 = arith.mulf %105, %107 : vector<8x128xf32>
    %c0_58 = arith.constant 0 : index
    %c0_59 = arith.constant 0 : index
    %109 = vector.load %arg19[%c0_58, %c0_59] : memref<1x128xf32, #tpu.memory_space<vmem>>, vector<1x128xf32>
    %110 = vector.broadcast %109 : vector<1x128xf32> to vector<8x128xf32>
    %111 = arith.addf %108, %110 : vector<8x128xf32>
    %c0_60 = arith.constant 0 : index
    %c0_61 = arith.constant 0 : index
    %112 = vector.load %arg20[%c0_60, %c0_61] : memref<8x128xf32, #tpu.memory_space<vmem>>, vector<8x128xf32>
    tpu.vector_store %arg20[%c0_60, %c0_61], %111 {strides = array<i32>} : memref<8x128xf32, #tpu.memory_space<vmem>>, vector<8x128xf32>,
    return
  }
  func.func @transform_0(%arg0: i32) -> (i32, i32) {
    %c0_i32 = arith.constant 0 : i32
    %c0_i32_0 = arith.constant 0 : i32
    return %arg0, %c0_i32 : i32, i32
  }
  func.func @transform_1(%arg0: i32) -> (i32, i32) {
    %c0_i32 = arith.constant 0 : i32
    %c0_i32_0 = arith.constant 0 : i32
    %c0_i32_1 = arith.constant 0 : i32
    return %c0_i32, %c0_i32_0 : i32, i32
  }
  func.func @transform_2(%arg0: i32) -> (i32, i32) {
    %c0_i32 = arith.constant 0 : i32
    %c0_i32_0 = arith.constant 0 : i32
    %c0_i32_1 = arith.constant 0 : i32
    return %c0_i32, %c0_i32_0 : i32, i32
  }
  func.func @transform_3(%arg0: i32) -> (i32, i32) {
    %c0_i32 = arith.constant 0 : i32
    %c0_i32_0 = arith.constant 0 : i32
    %c0_i32_1 = arith.constant 0 : i32
    return %c0_i32, %c0_i32_0 : i32, i32
  }
  func.func @transform_4(%arg0: i32) -> (i32, i32) {
    %c0_i32 = arith.constant 0 : i32
    %c0_i32_0 = arith.constant 0 : i32
    %c0_i32_1 = arith.constant 0 : i32
    return %c0_i32, %c0_i32_0 : i32, i32
  }
  func.func @transform_5(%arg0: i32) -> (i32, i32) {
    %c0_i32 = arith.constant 0 : i32
    %c0_i32_0 = arith.constant 0 : i32
    %c0_i32_1 = arith.constant 0 : i32
    return %c0_i32, %c0_i32_0 : i32, i32
  }
  func.func @transform_6(%arg0: i32) -> (i32, i32) {
    %c0_i32 = arith.constant 0 : i32
    %c0_i32_0 = arith.constant 0 : i32
    %c0_i32_1 = arith.constant 0 : i32
    return %c0_i32, %c0_i32_0 : i32, i32
  }
  func.func @transform_7(%arg0: i32) -> (i32, i32) {
    %c0_i32 = arith.constant 0 : i32
    %c0_i32_0 = arith.constant 0 : i32
    %c0_i32_1 = arith.constant 0 : i32
    return %c0_i32, %c0_i32_0 : i32, i32
  }
  func.func @transform_8(%arg0: i32) -> (i32, i32) {
    %c0_i32 = arith.constant 0 : i32
    %c0_i32_0 = arith.constant 0 : i32
    %c0_i32_1 = arith.constant 0 : i32
    return %c0_i32, %c0_i32_0 : i32, i32
  }
  func.func @transform_9(%arg0: i32) -> (i32, i32) {
    %c0_i32 = arith.constant 0 : i32
    %c0_i32_0 = arith.constant 0 : i32
    %c0_i32_1 = arith.constant 0 : i32
    return %c0_i32, %c0_i32_0 : i32, i32
  }
  func.func @transform_10(%arg0: i32) -> (i32, i32) {
    %c0_i32 = arith.constant 0 : i32
    %c0_i32_0 = arith.constant 0 : i32
    %c0_i32_1 = arith.constant 0 : i32
    return %c0_i32, %c0_i32_0 : i32, i32
  }
  func.func @transform_11(%arg0: i32) -> (i32, i32) {
    %c0_i32 = arith.constant 0 : i32
    %c0_i32_0 = arith.constant 0 : i32
    %c0_i32_1 = arith.constant 0 : i32
    return %c0_i32, %c0_i32_0 : i32, i32
  }
  func.func @transform_12(%arg0: i32) -> (i32, i32) {
    %c0_i32 = arith.constant 0 : i32
    %c0_i32_0 = arith.constant 0 : i32
    %c0_i32_1 = arith.constant 0 : i32
    return %c0_i32, %c0_i32_0 : i32, i32
  }
  func.func @transform_13(%arg0: i32) -> (i32, i32) {
    %c0_i32 = arith.constant 0 : i32
    %c0_i32_0 = arith.constant 0 : i32
    %c0_i32_1 = arith.constant 0 : i32
    return %c0_i32, %c0_i32_0 : i32, i32
  }
  func.func @transform_14(%arg0: i32) -> (i32, i32) {
    %c0_i32 = arith.constant 0 : i32
    %c0_i32_0 = arith.constant 0 : i32
    %c0_i32_1 = arith.constant 0 : i32
    return %c0_i32, %c0_i32_0 : i32, i32
  }
  func.func @transform_15(%arg0: i32) -> (i32, i32) {
    %c0_i32 = arith.constant 0 : i32
    %c0_i32_0 = arith.constant 0 : i32
    %c0_i32_1 = arith.constant 0 : i32
    return %c0_i32, %c0_i32_0 : i32, i32
  }
  func.func @transform_16(%arg0: i32) -> (i32, i32) {
    %c0_i32 = arith.constant 0 : i32
    %c0_i32_0 = arith.constant 0 : i32
    %c0_i32_1 = arith.constant 0 : i32
    return %c0_i32, %c0_i32_0 : i32, i32
  }
  func.func @transform_17(%arg0: i32) -> (i32, i32) {
    %c0_i32 = arith.constant 0 : i32
    %c0_i32_0 = arith.constant 0 : i32
    %c0_i32_1 = arith.constant 0 : i32
    return %c0_i32, %c0_i32_0 : i32, i32
  }
  func.func @transform_18(%arg0: i32) -> (i32, i32) {
    %c0_i32 = arith.constant 0 : i32
    %c0_i32_0 = arith.constant 0 : i32
    %c0_i32_1 = arith.constant 0 : i32
    return %c0_i32, %c0_i32_0 : i32, i32
  }
  func.func @transform_19(%arg0: i32) -> (i32, i32) {
    %c0_i32 = arith.constant 0 : i32
    %c0_i32_0 = arith.constant 0 : i32
    return %arg0, %c0_i32 : i32, i32
  }
}

module attributes {stable_mosaic.version = 11 : i64} {
  func.func @_fused_sequence_kernel(%arg0: i32, %arg1: memref<8x128xf32, #tpu.memory_space<vmem>>, %arg2: memref<128x256xf32, #tpu.memory_space<vmem>>, %arg3: memref<1x256xf32, #tpu.memory_space<vmem>>, %arg4: memref<128x128xf32, #tpu.memory_space<vmem>>, %arg5: memref<1x128xf32, #tpu.memory_space<vmem>>, %arg6: memref<1x128xf32, #tpu.memory_space<vmem>>, %arg7: memref<1x128xf32, #tpu.memory_space<vmem>>, %arg8: memref<128x256xf32, #tpu.memory_space<vmem>>, %arg9: memref<1x256xf32, #tpu.memory_space<vmem>>, %arg10: memref<128x128xf32, #tpu.memory_space<vmem>>, %arg11: memref<1x128xf32, #tpu.memory_space<vmem>>, %arg12: memref<1x128xf32, #tpu.memory_space<vmem>>, %arg13: memref<1x128xf32, #tpu.memory_space<vmem>>, %arg14: memref<128x256xf32, #tpu.memory_space<vmem>>, %arg15: memref<1x256xf32, #tpu.memory_space<vmem>>, %arg16: memref<128x128xf32, #tpu.memory_space<vmem>>, %arg17: memref<1x128xf32, #tpu.memory_space<vmem>>, %arg18: memref<1x128xf32, #tpu.memory_space<vmem>>, %arg19: memref<1x128xf32, #tpu.memory_space<vmem>>, %arg20: memref<8x128xf32, #tpu.memory_space<vmem>>) attributes {dimension_semantics = [#tpu.dimension_semantics<parallel>], iteration_bounds = array<i64: 1>, scalar_prefetch = 0 : i64, scratch_operands = 0 : i64, tpu.core_type = #tpu.core_type<tc>, window_params = [{transform_indices = @transform_0, window_bounds = array<i64: 8, 128>}, {pipeline_mode = #tpu.pipeline_mode<synchronous>, transform_indices = @transform_1, window_bounds = array<i64: 128, 256>}, {pipeline_mode = #tpu.pipeline_mode<synchronous>, transform_indices = @transform_2, window_bounds = array<i64: 1, 256>}, {pipeline_mode = #tpu.pipeline_mode<synchronous>, transform_indices = @transform_3, window_bounds = array<i64: 128, 128>}, {pipeline_mode = #tpu.pipeline_mode<synchronous>, transform_indices = @transform_4, window_bounds = array<i64: 1, 128>}, {pipeline_mode = #tpu.pipeline_mode<synchronous>, transform_indices = @transform_5, window_bounds = array<i64: 1, 128>}, {pipeline_mode = #tpu.pipeline_mode<synchronous>, transform_indices = @transform_6, window_bounds = array<i64: 1, 128>}, {pipeline_mode = #tpu.pipeline_mode<synchronous>, transform_indices = @transform_7, window_bounds = array<i64: 128, 256>}, {pipeline_mode = #tpu.pipeline_mode<synchronous>, transform_indices = @transform_8, window_bounds = array<i64: 1, 256>}, {pipeline_mode = #tpu.pipeline_mode<synchronous>, transform_indices = @transform_9, window_bounds = array<i64: 128, 128>}, {pipeline_mode = #tpu.pipeline_mode<synchronous>, transform_indices = @transform_10, window_bounds = array<i64: 1, 128>}, {pipeline_mode = #tpu.pipeline_mode<synchronous>, transform_indices = @transform_11, window_bounds = array<i64: 1, 128>}, {pipeline_mode = #tpu.pipeline_mode<synchronous>, transform_indices = @transform_12, window_bounds = array<i64: 1, 128>}, {pipeline_mode = #tpu.pipeline_mode<synchronous>, transform_indices = @transform_13, window_bounds = array<i64: 128, 256>}, {pipeline_mode = #tpu.pipeline_mode<synchronous>, transform_indices = @transform_14, window_bounds = array<i64: 1, 256>}, {pipeline_mode = #tpu.pipeline_mode<synchronous>, transform_indices = @transform_15, window_bounds = array<i64: 128, 128>}, {pipeline_mode = #tpu.pipeline_mode<synchronous>, transform_indices = @transform_16, window_bounds = array<i64: 1, 128>}, {pipeline_mode = #tpu.pipeline_mode<synchronous>, transform_indices = @transform_17, window_bounds = array<i64: 1, 128>}, {pipeline_mode = #tpu.pipeline_mode<synchronous>, transform_indices = @transform_18, window_bounds = array<i64: 1, 128>}, {transform_indices = @transform_19, window_bounds = array<i64: 8, 128>}]} {
    %c0 = arith.constant 0 : index
    %c0_0 = arith.constant 0 : index
    %0 = vector.load %arg1[%c0, %c0_0] : memref<8x128xf32, #tpu.memory_space<vmem>>, vector<8x128xf32>
    %c0_1 = arith.constant 0 : index
    %c0_2 = arith.constant 0 : index
    %1 = vector.load %arg2[%c0_1, %c0_2] : memref<128x256xf32, #tpu.memory_space<vmem>>, vector<128x256xf32>
    %cst = arith.constant dense<0.000000e+00> : vector<8x256xf32>
    %2 = tpu.matmul %0, %1, %cst {dimension_numbers = #tpu.dot_dimension_numbers<[1], [0], [0], [1], [0, 0, 1, 1], [], []>} : vector<8x128xf32>, vector<128x256xf32>, vector<8x256xf32> -> vector<8x256xf32>
    %c0_3 = arith.constant 0 : index
    %c0_4 = arith.constant 0 : index
    %3 = vector.load %arg3[%c0_3, %c0_4] : memref<1x256xf32, #tpu.memory_space<vmem>>, vector<1x256xf32>
    %4 = vector.broadcast %3 : vector<1x256xf32> to vector<8x256xf32>
    %5 = arith.addf %2, %4 : vector<8x256xf32>
    %6 = vector.extract_strided_slice %5 {offsets = [0, 0], sizes = [8, 128], strides = [1, 1]} : vector<8x256xf32> to vector<8x128xf32>
    %cst_5 = arith.constant 0.000000e+00 : f32
    %7 = vector.broadcast %cst_5 : f32 to vector<8x128xf32>
    %8 = arith.maximumf %6, %7 : vector<8x128xf32>
    %9 = vector.extract_strided_slice %5 {offsets = [0, 128], sizes = [8, 128], strides = [1, 1]} : vector<8x256xf32> to vector<8x128xf32>
    %c0_6 = arith.constant 0 : index
    %c0_7 = arith.constant 0 : index
    %10 = vector.load %arg4[%c0_6, %c0_7] : memref<128x128xf32, #tpu.memory_space<vmem>>, vector<128x128xf32>
    %cst_8 = arith.constant dense<0.000000e+00> : vector<8x128xf32>
    %11 = tpu.matmul %8, %10, %cst_8 {dimension_numbers = #tpu.dot_dimension_numbers<[1], [0], [0], [1], [0, 0, 1, 1], [], []>} : vector<8x128xf32>, vector<128x128xf32>, vector<8x128xf32> -> vector<8x128xf32>
    %c0_9 = arith.constant 0 : index
    %c0_10 = arith.constant 0 : index
    %12 = vector.load %arg5[%c0_9, %c0_10] : memref<1x128xf32, #tpu.memory_space<vmem>>, vector<1x128xf32>
    %13 = vector.broadcast %12 : vector<1x128xf32> to vector<8x128xf32>
    %14 = arith.addf %11, %13 : vector<8x128xf32>
    %15 = arith.addf %14, %9 : vector<8x128xf32>
    %cst_11 = arith.constant dense<0.000000e+00> : vector<8xf32>
    %16 = vector.multi_reduction <add>, %15, %cst_11 [1] : vector<8x128xf32> to vector<8xf32>
    %17 = vector.shape_cast %16 : vector<8xf32> to vector<8x1xf32>
    %cst_12 = arith.constant 3.125000e-02 : f32
    %18 = vector.broadcast %cst_12 : f32 to vector<8x1xf32>
    %19 = arith.mulf %17, %18 : vector<8x1xf32>
    %20 = vector.broadcast %19 : vector<8x1xf32> to vector<8x128xf32>
    %21 = arith.subf %15, %20 : vector<8x128xf32>
    %22 = arith.mulf %21, %15 : vector<8x128xf32>
    %cst_13 = arith.constant dense<0.000000e+00> : vector<8xf32>
    %23 = vector.multi_reduction <add>, %22, %cst_13 [1] : vector<8x128xf32> to vector<8xf32>
    %24 = vector.shape_cast %23 : vector<8xf32> to vector<8x1xf32>
    %cst_14 = arith.constant 3.125000e-02 : f32
    %25 = vector.broadcast %cst_14 : f32 to vector<8x1xf32>
    %26 = arith.mulf %24, %25 : vector<8x1xf32>
    %cst_15 = arith.constant 9.99999974E-6 : f32
    %27 = vector.broadcast %cst_15 : f32 to vector<8x1xf32>
    %28 = arith.addf %26, %27 : vector<8x1xf32>
    %29 = math.rsqrt %28 : vector<8x1xf32>
    %30 = vector.broadcast %29 : vector<8x1xf32> to vector<8x128xf32>
    %31 = arith.mulf %21, %30 : vector<8x128xf32>
    %c0_16 = arith.constant 0 : index
    %c0_17 = arith.constant 0 : index
    %32 = vector.load %arg6[%c0_16, %c0_17] : memref<1x128xf32, #tpu.memory_space<vmem>>, vector<1x128xf32>
    %33 = vector.broadcast %32 : vector<1x128xf32> to vector<8x128xf32>
    %34 = arith.mulf %31, %33 : vector<8x128xf32>
    %c0_18 = arith.constant 0 : index
    %c0_19 = arith.constant 0 : index
    %35 = vector.load %arg7[%c0_18, %c0_19] : memref<1x128xf32, #tpu.memory_space<vmem>>, vector<1x128xf32>
    %36 = vector.broadcast %35 : vector<1x128xf32> to vector<8x128xf32>
    %37 = arith.addf %34, %36 : vector<8x128xf32>
    %c0_20 = arith.constant 0 : index
    %c0_21 = arith.constant 0 : index
    %38 = vector.load %arg8[%c0_20, %c0_21] : memref<128x256xf32, #tpu.memory_space<vmem>>, vector<128x256xf32>
    %cst_22 = arith.constant dense<0.000000e+00> : vector<8x256xf32>
    %39 = tpu.matmul %37, %38, %cst_22 {dimension_numbers = #tpu.dot_dimension_numbers<[1], [0], [0], [1], [0, 0, 1, 1], [], []>} : vector<8x128xf32>, vector<128x256xf32>, vector<8x256xf32> -> vector<8x256xf32>
    %c0_23 = arith.constant 0 : index
    %c0_24 = arith.constant 0 : index
    %40 = vector.load %arg9[%c0_23, %c0_24] : memref<1x256xf32, #tpu.memory_space<vmem>>, vector<1x256xf32>
    %41 = vector.broadcast %40 : vector<1x256xf32> to vector<8x256xf32>
    %42 = arith.addf %39, %41 : vector<8x256xf32>
    %43 = vector.extract_strided_slice %42 {offsets = [0, 0], sizes = [8, 128], strides = [1, 1]} : vector<8x256xf32> to vector<8x128xf32>
    %cst_25 = arith.constant 0.000000e+00 : f32
    %44 = vector.broadcast %cst_25 : f32 to vector<8x128xf32>
    %45 = arith.maximumf %43, %44 : vector<8x128xf32>
    %46 = vector.extract_strided_slice %42 {offsets = [0, 128], sizes = [8, 128], strides = [1, 1]} : vector<8x256xf32> to vector<8x128xf32>
    %c0_26 = arith.constant 0 : index
    %c0_27 = arith.constant 0 : index
    %47 = vector.load %arg10[%c0_26, %c0_27] : memref<128x128xf32, #tpu.memory_space<vmem>>, vector<128x128xf32>
    %cst_28 = arith.constant dense<0.000000e+00> : vector<8x128xf32>
    %48 = tpu.matmul %45, %47, %cst_28 {dimension_numbers = #tpu.dot_dimension_numbers<[1], [0], [0], [1], [0, 0, 1, 1], [], []>} : vector<8x128xf32>, vector<128x128xf32>, vector<8x128xf32> -> vector<8x128xf32>
    %c0_29 = arith.constant 0 : index
    %c0_30 = arith.constant 0 : index
    %49 = vector.load %arg11[%c0_29, %c0_30] : memref<1x128xf32, #tpu.memory_space<vmem>>, vector<1x128xf32>
    %50 = vector.broadcast %49 : vector<1x128xf32> to vector<8x128xf32>
    %51 = arith.addf %48, %50 : vector<8x128xf32>
    %52 = arith.addf %51, %46 : vector<8x128xf32>
    %cst_31 = arith.constant dense<0.000000e+00> : vector<8xf32>
    %53 = vector.multi_reduction <add>, %52, %cst_31 [1] : vector<8x128xf32> to vector<8xf32>
    %54 = vector.shape_cast %53 : vector<8xf32> to vector<8x1xf32>
    %cst_32 = arith.constant 3.125000e-02 : f32
    %55 = vector.broadcast %cst_32 : f32 to vector<8x1xf32>
    %56 = arith.mulf %54, %55 : vector<8x1xf32>
    %57 = vector.broadcast %56 : vector<8x1xf32> to vector<8x128xf32>
    %58 = arith.subf %52, %57 : vector<8x128xf32>
    %59 = arith.mulf %58, %52 : vector<8x128xf32>
    %cst_33 = arith.constant dense<0.000000e+00> : vector<8xf32>
    %60 = vector.multi_reduction <add>, %59, %cst_33 [1] : vector<8x128xf32> to vector<8xf32>
    %61 = vector.shape_cast %60 : vector<8xf32> to vector<8x1xf32>
    %cst_34 = arith.constant 3.125000e-02 : f32
    %62 = vector.broadcast %cst_34 : f32 to vector<8x1xf32>
    %63 = arith.mulf %61, %62 : vector<8x1xf32>
    %cst_35 = arith.constant 9.99999974E-6 : f32
    %64 = vector.broadcast %cst_35 : f32 to vector<8x1xf32>
    %65 = arith.addf %63, %64 : vector<8x1xf32>
    %66 = math.rsqrt %65 : vector<8x1xf32>
    %67 = vector.broadcast %66 : vector<8x1xf32> to vector<8x128xf32>
    %68 = arith.mulf %58, %67 : vector<8x128xf32>
    %c0_36 = arith.constant 0 : index
    %c0_37 = arith.constant 0 : index
    %69 = vector.load %arg12[%c0_36, %c0_37] : memref<1x128xf32, #tpu.memory_space<vmem>>, vector<1x128xf32>
    %70 = vector.broadcast %69 : vector<1x128xf32> to vector<8x128xf32>
    %71 = arith.mulf %68, %70 : vector<8x128xf32>
    %c0_38 = arith.constant 0 : index
    %c0_39 = arith.constant 0 : index
    %72 = vector.load %arg13[%c0_38, %c0_39] : memref<1x128xf32, #tpu.memory_space<vmem>>, vector<1x128xf32>
    %73 = vector.broadcast %72 : vector<1x128xf32> to vector<8x128xf32>
    %74 = arith.addf %71, %73 : vector<8x128xf32>
    %c0_40 = arith.constant 0 : index
    %c0_41 = arith.constant 0 : index
    %75 = vector.load %arg14[%c0_40, %c0_41] : memref<128x256xf32, #tpu.memory_space<vmem>>, vector<128x256xf32>
    %cst_42 = arith.constant dense<0.000000e+00> : vector<8x256xf32>
    %76 = tpu.matmul %74, %75, %cst_42 {dimension_numbers = #tpu.dot_dimension_numbers<[1], [0], [0], [1], [0, 0, 1, 1], [], []>} : vector<8x128xf32>, vector<128x256xf32>, vector<8x256xf32> -> vector<8x256xf32>
    %c0_43 = arith.constant 0 : index
    %c0_44 = arith.constant 0 : index
    %77 = vector.load %arg15[%c0_43, %c0_44] : memref<1x256xf32, #tpu.memory_space<vmem>>, vector<1x256xf32>
    %78 = vector.broadcast %77 : vector<1x256xf32> to vector<8x256xf32>
    %79 = arith.addf %76, %78 : vector<8x256xf32>
    %80 = vector.extract_strided_slice %79 {offsets = [0, 0], sizes = [8, 128], strides = [1, 1]} : vector<8x256xf32> to vector<8x128xf32>
    %cst_45 = arith.constant 0.000000e+00 : f32
    %81 = vector.broadcast %cst_45 : f32 to vector<8x128xf32>
    %82 = arith.maximumf %80, %81 : vector<8x128xf32>
    %83 = vector.extract_strided_slice %79 {offsets = [0, 128], sizes = [8, 128], strides = [1, 1]} : vector<8x256xf32> to vector<8x128xf32>
    %c0_46 = arith.constant 0 : index
    %c0_47 = arith.constant 0 : index
    %84 = vector.load %arg16[%c0_46, %c0_47] : memref<128x128xf32, #tpu.memory_space<vmem>>, vector<128x128xf32>
    %cst_48 = arith.constant dense<0.000000e+00> : vector<8x128xf32>
    %85 = tpu.matmul %82, %84, %cst_48 {dimension_numbers = #tpu.dot_dimension_numbers<[1], [0], [0], [1], [0, 0, 1, 1], [], []>} : vector<8x128xf32>, vector<128x128xf32>, vector<8x128xf32> -> vector<8x128xf32>
    %c0_49 = arith.constant 0 : index
    %c0_50 = arith.constant 0 : index
    %86 = vector.load %arg17[%c0_49, %c0_50] : memref<1x128xf32, #tpu.memory_space<vmem>>, vector<1x128xf32>
    %87 = vector.broadcast %86 : vector<1x128xf32> to vector<8x128xf32>
    %88 = arith.addf %85, %87 : vector<8x128xf32>
    %89 = arith.addf %88, %83 : vector<8x128xf32>
    %cst_51 = arith.constant dense<0.000000e+00> : vector<8xf32>
    %90 = vector.multi_reduction <add>, %89, %cst_51 [1] : vector<8x128xf32> to vector<8xf32>
    %91 = vector.shape_cast %90 : vector<8xf32> to vector<8x1xf32>
    %cst_52 = arith.constant 0.0416666679 : f32
    %92 = vector.broadcast %cst_52 : f32 to vector<8x1xf32>
    %93 = arith.mulf %91, %92 : vector<8x1xf32>
    %94 = vector.broadcast %93 : vector<8x1xf32> to vector<8x128xf32>
    %95 = arith.subf %89, %94 : vector<8x128xf32>
    %96 = arith.mulf %95, %89 : vector<8x128xf32>
    %cst_53 = arith.constant dense<0.000000e+00> : vector<8xf32>
    %97 = vector.multi_reduction <add>, %96, %cst_53 [1] : vector<8x128xf32> to vector<8xf32>
    %98 = vector.shape_cast %97 : vector<8xf32> to vector<8x1xf32>
    %cst_54 = arith.constant 0.0416666679 : f32
    %99 = vector.broadcast %cst_54 : f32 to vector<8x1xf32>
    %100 = arith.mulf %98, %99 : vector<8x1xf32>
    %cst_55 = arith.constant 9.99999974E-6 : f32
    %101 = vector.broadcast %cst_55 : f32 to vector<8x1xf32>
    %102 = arith.addf %100, %101 : vector<8x1xf32>
    %103 = math.rsqrt %102 : vector<8x1xf32>
    %104 = vector.broadcast %103 : vector<8x1xf32> to vector<8x128xf32>
    %105 = arith.mulf %95, %104 : vector<8x128xf32>
    %c0_56 = arith.constant 0 : index
    %c0_57 = arith.constant 0 : index
    %106 = vector.load %arg18[%c0_56, %c0_57] : memref<1x128xf32, #tpu.memory_space<vmem>>, vector<1x128xf32>
    %107 = vector.broadcast %106 : vector<1x128xf32> to vector<8x128xf32>
    %108 = arith.mulf %105, %107 : vector<8x128xf32>
    %c0_58 = arith.constant 0 : index
    %c0_59 = arith.constant 0 : index
    %109 = vector.load %arg19[%c0_58, %c0_59] : memref<1x128xf32, #tpu.memory_space<vmem>>, vector<1x128xf32>
    %110 = vector.broadcast %109 : vector<1x128xf32> to vector<8x128xf32>
    %111 = arith.addf %108, %110 : vector<8x128xf32>
    %c0_60 = arith.constant 0 : index
    %c0_61 = arith.constant 0 : index
    %112 = vector.load %arg20[%c0_60, %c0_61] : memref<8x128xf32, #tpu.memory_space<vmem>>, vector<8x128xf32>
    tpu.vector_store %arg20[%c0_60, %c0_61], %111 {strides = array<i32>} : memref<8x128xf32, #tpu.memory_space<vmem>>, vector<8x128xf32>,
    return
  }
  func.func @transform_0(%arg0: i32) -> (i32, i32) {
    %c0_i32 = arith.constant 0 : i32
    %c0_i32_0 = arith.constant 0 : i32
    return %arg0, %c0_i32 : i32, i32
  }
  func.func @transform_1(%arg0: i32) -> (i32, i32) {
    %c0_i32 = arith.constant 0 : i32
    %c0_i32_0 = arith.constant 0 : i32
    %c0_i32_1 = arith.constant 0 : i32
    return %c0_i32, %c0_i32_0 : i32, i32
  }
  func.func @transform_2(%arg0: i32) -> (i32, i32) {
    %c0_i32 = arith.constant 0 : i32
    %c0_i32_0 = arith.constant 0 : i32
    %c0_i32_1 = arith.constant 0 : i32
    return %c0_i32, %c0_i32_0 : i32, i32
  }
  func.func @transform_3(%arg0: i32) -> (i32, i32) {
    %c0_i32 = arith.constant 0 : i32
    %c0_i32_0 = arith.constant 0 : i32
    %c0_i32_1 = arith.constant 0 : i32
    return %c0_i32, %c0_i32_0 : i32, i32
  }
  func.func @transform_4(%arg0: i32) -> (i32, i32) {
    %c0_i32 = arith.constant 0 : i32
    %c0_i32_0 = arith.constant 0 : i32
    %c0_i32_1 = arith.constant 0 : i32
    return %c0_i32, %c0_i32_0 : i32, i32
  }
  func.func @transform_5(%arg0: i32) -> (i32, i32) {
    %c0_i32 = arith.constant 0 : i32
    %c0_i32_0 = arith.constant 0 : i32
    %c0_i32_1 = arith.constant 0 : i32
    return %c0_i32, %c0_i32_0 : i32, i32
  }
  func.func @transform_6(%arg0: i32) -> (i32, i32) {
    %c0_i32 = arith.constant 0 : i32
    %c0_i32_0 = arith.constant 0 : i32
    %c0_i32_1 = arith.constant 0 : i32
    return %c0_i32, %c0_i32_0 : i32, i32
  }
  func.func @transform_7(%arg0: i32) -> (i32, i32) {
    %c0_i32 = arith.constant 0 : i32
    %c0_i32_0 = arith.constant 0 : i32
    %c0_i32_1 = arith.constant 0 : i32
    return %c0_i32, %c0_i32_0 : i32, i32
  }
  func.func @transform_8(%arg0: i32) -> (i32, i32) {
    %c0_i32 = arith.constant 0 : i32
    %c0_i32_0 = arith.constant 0 : i32
    %c0_i32_1 = arith.constant 0 : i32
    return %c0_i32, %c0_i32_0 : i32, i32
  }
  func.func @transform_9(%arg0: i32) -> (i32, i32) {
    %c0_i32 = arith.constant 0 : i32
    %c0_i32_0 = arith.constant 0 : i32
    %c0_i32_1 = arith.constant 0 : i32
    return %c0_i32, %c0_i32_0 : i32, i32
  }
  func.func @transform_10(%arg0: i32) -> (i32, i32) {
    %c0_i32 = arith.constant 0 : i32
    %c0_i32_0 = arith.constant 0 : i32
    %c0_i32_1 = arith.constant 0 : i32
    return %c0_i32, %c0_i32_0 : i32, i32
  }
  func.func @transform_11(%arg0: i32) -> (i32, i32) {
    %c0_i32 = arith.constant 0 : i32
    %c0_i32_0 = arith.constant 0 : i32
    %c0_i32_1 = arith.constant 0 : i32
    return %c0_i32, %c0_i32_0 : i32, i32
  }
  func.func @transform_12(%arg0: i32) -> (i32, i32) {
    %c0_i32 = arith.constant 0 : i32
    %c0_i32_0 = arith.constant 0 : i32
    %c0_i32_1 = arith.constant 0 : i32
    return %c0_i32, %c0_i32_0 : i32, i32
  }
  func.func @transform_13(%arg0: i32) -> (i32, i32) {
    %c0_i32 = arith.constant 0 : i32
    %c0_i32_0 = arith.constant 0 : i32
    %c0_i32_1 = arith.constant 0 : i32
    return %c0_i32, %c0_i32_0 : i32, i32
  }
  func.func @transform_14(%arg0: i32) -> (i32, i32) {
    %c0_i32 = arith.constant 0 : i32
    %c0_i32_0 = arith.constant 0 : i32
    %c0_i32_1 = arith.constant 0 : i32
    return %c0_i32, %c0_i32_0 : i32, i32
  }
  func.func @transform_15(%arg0: i32) -> (i32, i32) {
    %c0_i32 = arith.constant 0 : i32
    %c0_i32_0 = arith.constant 0 : i32
    %c0_i32_1 = arith.constant 0 : i32
    return %c0_i32, %c0_i32_0 : i32, i32
  }
  func.func @transform_16(%arg0: i32) -> (i32, i32) {
    %c0_i32 = arith.constant 0 : i32
    %c0_i32_0 = arith.constant 0 : i32
    %c0_i32_1 = arith.constant 0 : i32
    return %c0_i32, %c0_i32_0 : i32, i32
  }
  func.func @transform_17(%arg0: i32) -> (i32, i32) {
    %c0_i32 = arith.constant 0 : i32
    %c0_i32_0 = arith.constant 0 : i32
    %c0_i32_1 = arith.constant 0 : i32
    return %c0_i32, %c0_i32_0 : i32, i32
  }
  func.func @transform_18(%arg0: i32) -> (i32, i32) {
    %c0_i32 = arith.constant 0 : i32
    %c0_i32_0 = arith.constant 0 : i32
    %c0_i32_1 = arith.constant 0 : i32
    return %c0_i32, %c0_i32_0 : i32, i32
  }
  func.func @transform_19(%arg0: i32) -> (i32, i32) {
    %c0_i32 = arith.constant 0 : i32
    %c0_i32_0 = arith.constant 0 : i32
    return %arg0, %c0_i32 : i32, i32
  }
}

</mosaic_0001>

<bundles_post_ra>
// kernel: tpu_custom_call.1
= control target key start
LH: loop header
LB: loop body
LE: loop exit
PB: predicated region body
PF: predicated region fallthrough
CT: control target
= control target key end

     0   :  { %s1194_s0 = inlined_call_operand.hbm [shape: f32[8,128], index: 0, kind: input, shape index: {}]   ;;  %s1195_s1 = inlined_call_operand.hbm [shape: f32[128,256], index: 1, kind: input, shape index: {}]   ;;  %s1196_s2 = inlined_call_operand.hbm [shape: f32[1,256], index: 2, kind: input, shape index: {}]   ;;  %s1197_s3 = inlined_call_operand.hbm [shape: f32[128,128], index: 3, kind: input, shape index: {}]   ;;  %s1198_s4 = inlined_call_operand.hbm [shape: f32[1,128], index: 4, kind: input, shape index: {}]   ;;  %s1199_s5 = inlined_call_operand.hbm [shape: f32[1,128], index: 5, kind: input, shape index: {}]   ;;  %s1200_s6 = inlined_call_operand.vmem [shape: f32[1,128], index: 6, kind: input, shape index: {}]   ;;  %s1201_s7 = inlined_call_operand.hbm [shape: f32[128,256], index: 7, kind: input, shape index: {}]   ;;  %s1202_s8 = inlined_call_operand.vmem [shape: f32[1,256], index: 8, kind: input, shape index: {}]   ;;  %s1203_s9 = inlined_call_operand.hbm [shape: f32[128,128], index: 9, kind: input, shape index: {}]   ;;  %s1204_s10 = inlined_call_operand.vmem [shape: f32[1,128], index: 10, kind: input, shape index: {}]   ;;  %s1205_s11 = inlined_call_operand.vmem [shape: f32[1,128], index: 11, kind: input, shape index: {}]   ;;  %s1206_s12 = inlined_call_operand.vmem [shape: f32[1,128], index: 12, kind: input, shape index: {}]   ;;  %s1207_s13 = inlined_call_operand.hbm [shape: f32[128,256], index: 13, kind: input, shape index: {}]   ;;  %s1208_s14 = inlined_call_operand.vmem [shape: f32[1,256], index: 14, kind: input, shape index: {}]   ;;  %s1209_s15 = inlined_call_operand.hbm [shape: f32[128,128], index: 15, kind: input, shape index: {}]   ;;  %s1210_s16 = inlined_call_operand.vmem [shape: f32[1,128], index: 16, kind: input, shape index: {}]   ;;  %s1211_s17 = inlined_call_operand.vmem [shape: f32[1,128], index: 17, kind: input, shape index: {}]   ;;  %s1212_s18 = inlined_call_operand.vmem [shape: f32[1,128], index: 18, kind: input, shape index: {}]   ;;  %s1213_s19 = inlined_call_operand.hbm [shape: f32[8,128], index: 19, kind: output, shape index: {}]  }
   0x1   :  { %1218 = sst [smem:[#allocation27_spill]] %s1194_s0 }
   0x2   :  { %1219 = sst [smem:[#allocation28_spill]] %s1195_s1 }
   0x3   :  { %1220 = sst [smem:[#allocation29_spill]] %s1196_s2 }
   0x4   :  { %1221 = sst [smem:[#allocation30_spill]] %s1197_s3 }
   0x5   :  { %1222 = sst [smem:[#allocation31_spill]] %s1212_s18 }
   0x6   :  { %1223 = sst [smem:[#allocation32_spill]] %s1213_s19 }
   0x7   :  { %24 = vsyncpa [#allocation3], 0 }
   0x8   :  { %25 = vsyncpa [#allocation6], 0 }
   0x9   :  { %26 = vsyncpa [#allocation9], 0 }
   0xa   :  { %27 = vsyncpa [#allocation12], 0 }
   0xb   :  { %28 = vsyncpa [#allocation15], 0 }
   0xc   :  { %29 = vsyncpa [#allocation18], 0  ;;  %s1224_s20 = sld [smem:[#allocation28_spill]] }
  0x12   :  { %s46_s21 = sshll.u32 %s1224_s20, 4  ;;  %s47_s21 = int_to_ptr.hbm [resolvable:$true] %s46_s21 }
  0x13   :  { %30 = vsyncpa [#allocation4], 0  ;;  %s993_s1 = smov [#allocation5]   ;;  %s1225_s24 = sld [smem:[#allocation30_spill]] }
  0x14   :  { %s48_s22 = sshll.u32 %s993_s1, 4  ;;  %s1214_s3 = smov 256   ;;  %s49_s22 = int_to_ptr.vmem [resolvable:$true] %s48_s22 }
  0x15   :  { %s1216_s26 = smov 16   ;;  %s996_s27 = smov [#allocation8]  }
  0x16   :  { %54 = dma.hbm_to_vmem [thread:$0]  %s47_s21, 4096, %s49_s22, [#allocation6], %s1214_s3, %s1214_s3, %s1216_s26  }
  0x17   :  { %s72_s28 = sshll.u32 %s996_s27, 4  ;;  %s997_s29 = smov 128   ;;  %s73_s28 = int_to_ptr.vmem [resolvable:$true] %s72_s28 }
  0x18   :  { %s998_s0 = smov 8   ;;  %s95_s1 = sshll.u32 %s1199_s5, 4  ;;  %s96_s1 = int_to_ptr.hbm [resolvable:$true] %s95_s1 }
  0x19   :  { %s70_s25 = sshll.u32 %s1225_s24, 4  ;;  %s999_s2 = smov [#allocation11]   ;;  %s71_s25 = int_to_ptr.hbm [resolvable:$true] %s70_s25 }
  0x1a   :  { %78 = dma.hbm_to_vmem [thread:$0]  %s71_s25, 2048, %s73_s28, [#allocation9], %s997_s29, %s997_s29, %s998_s0  }
  0x1b   :  { %s97_s23 = sshll.u32 %s999_s2, 4  ;;  %s122_s22 = sshll.u32 %s1203_s9, 4  ;;  %s98_s23 = int_to_ptr.vmem [resolvable:$true] %s97_s23  ;;  %s123_s22 = int_to_ptr.hbm [resolvable:$true] %s122_s22 }
  0x1c   :  { %100 = dma.hbm_to_vmem [thread:$0]  %s96_s1, 16, %s98_s23, [#allocation12]  }
  0x1d   :  { %s1000_s27 = smov [#allocation14]   ;;  %s1226_s18 = sld [smem:[#allocation27_spill]] }
  0x1e   :  { %s124_s3 = sshll.u32 %s1000_s27, 4  ;;  %s1227_s30 = sld [smem:[#allocation29_spill]]  ;;  %s125_s3 = int_to_ptr.vmem [resolvable:$true] %s124_s3 }
  0x1f   :  { %130 = dma.hbm_to_vmem [thread:$0]  %s123_s22, 2048, %s125_s3, [#allocation15], %s997_s29, %s997_s29, %s998_s0  }
  0x20   :  { %s1001_s2 = smov [#allocation2]   ;;  %s1002_s1 = smov [#allocation7]  }
  0x21   :  { %s38_s9 = sshll.u32 %s1001_s2, 4  ;;  %s62_s23 = sshll.u32 %s1002_s1, 4  ;;  %s39_s9 = int_to_ptr.vmem [resolvable:$true] %s38_s9  ;;  %s63_s23 = int_to_ptr.vmem [resolvable:$true] %s62_s23 }
  0x22   :  { %s107_s21 = sshll.u32 %s1201_s7, 4  ;;  %s1003_s22 = smov [#allocation10]   ;;  %s108_s21 = int_to_ptr.hbm [resolvable:$true] %s107_s21 }
  0x23   :  { %s36_s25 = sshll.u32 %s1226_s18, 4  ;;  %s84_s18 = sshll.u32 %s1198_s4, 4  ;;  %s37_s25 = int_to_ptr.hbm [resolvable:$true] %s36_s25  ;;  %s85_s18 = int_to_ptr.hbm [resolvable:$true] %s84_s18 }
  0x24   :  { %s60_s20 = sshll.u32 %s1227_s30, 4  ;;  %s86_s27 = sshll.u32 %s1003_s22, 4  ;;  %s61_s20 = int_to_ptr.hbm [resolvable:$true] %s60_s20  ;;  %s87_s27 = int_to_ptr.vmem [resolvable:$true] %s86_s27 }
  0x25   :  { %41 = dma.hbm_to_vmem [thread:$0]  %s37_s25, 128, %s39_s9, [#allocation3]  }
  0x26   :  { %65 = dma.hbm_to_vmem [thread:$0]  %s61_s20, 32, %s63_s23, [#allocation6]  }
  0x27   :  { %89 = dma.hbm_to_vmem [thread:$0]  %s85_s18, 16, %s87_s27, [#allocation9]  }
  0x28   :  { %s1004_s5 = smov [#allocation13]   ;;  %s141_s2 = sshll.u32 %s1207_s13, 4  ;;  %s142_s2 = int_to_ptr.hbm [resolvable:$true] %s141_s2 }
  0x29   :  { %s109_s25 = sshll.u32 %s1004_s5, 4  ;;  %s1228_s4 = smov 16   ;;  %s110_s25 = int_to_ptr.vmem [resolvable:$true] %s109_s25 }
  0x2a   :  { %s1229_s9 = smov 256   ;;  %s156_s7 = sshll.u32 %s1209_s15, 4  ;;  %s157_s7 = int_to_ptr.hbm [resolvable:$true] %s156_s7 }
  0x2b   :  { %115 = dma.hbm_to_vmem [thread:$0]  %s108_s21, 4096, %s110_s25, [#allocation12], %s1229_s9, %s1229_s9, %s1228_s4  }
  0x2c   :  { %s1005_s23 = smov [#allocation16]   ;;  %s1006_s19 = smov [#allocation17]  }
  0x2d   :  { %s143_s24 = sshll.u32 %s1005_s23, 4  ;;  %s158_s13 = sshll.u32 %s1006_s19, 4  ;;  %s144_s24 = int_to_ptr.vmem [resolvable:$true] %s143_s24  ;;  %s159_s13 = int_to_ptr.vmem [resolvable:$true] %s158_s13 }
  0x2e   :  { %149 = dma.hbm_to_vmem [thread:$0]  %s142_s2, 4096, %s144_s24, [#allocation15], %s1229_s9, %s1229_s9, %s1228_s4  }
  0x2f   :  { %164 = dma.hbm_to_vmem [thread:$0]  %s157_s7, 2048, %s159_s13, [#allocation18], %s997_s29, %s997_s29, %s998_s0  }
  0x30   :  { %979 = dma.done.wait [#allocation3], 128  }
  0x31   :  { %980 = vsyncadd [#allocation3], 4294967168 }
  0x32   :  { %981 = dma.done.wait [#allocation6], 4128  }
  0x33   :  { %982 = vsyncadd [#allocation6], 4294963168 }
  0x34   :  { %983 = dma.done.wait [#allocation9], 2064  }
  0x35   :  { %984 = vsyncadd [#allocation9], 4294965232 }
  0x36   :  { %985 = dma.done.wait [#allocation12], 4112  }
  0x37   :  { %986 = vsyncadd [#allocation12], 4294963184 }
  0x38   :  { %987 = dma.done.wait [#allocation15], 6144  }
  0x39   :  { %988 = vsyncadd [#allocation15], 4294961152 }
  0x3a   :  { %989 = dma.done.wait [#allocation18], 2048  }
  0x3b   :  { %990 = vsyncadd [#allocation18], 4294965248  ;;  %v242_v0 = vld [vmem:[#allocation5 + $0xf0] sm:$0xff]  ;;  %v240_v1 = vld [vmem:[#allocation5 + $0xe0] sm:$0xff]  ;;  %s1230_s28 = sld [smem:[#allocation31_spill]]  ;;  %s1007_s30 = smov [#allocation19]  }
  0x3c   :  { %250 = vmatpush.msra.mxu0 %v242_v0  ;;  %v238_v2 = vld [vmem:[#allocation5 + $0xd0] sm:$0xff]  ;;  %v236_v3 = vld [vmem:[#allocation5 + $0xc0] sm:$0xff]  ;;  %v243_v7 = vld [vmem:[#allocation5 + $0xf8] sm:$0xff]  ;;  %s668_s2 = sshll.u32 %s1007_s30, 4  ;;  %s1231_s20 = sld [smem:[#allocation32_spill]]  ;;  %s669_s2 = int_to_ptr.vmem [resolvable:$true] %s668_s2 }
  0x3d   :  { %v306_v4 = vld [vmem:[#allocation8 + $0x78] sm:$0xff]  ;;  %v234_v5 = vld [vmem:[#allocation5 + $0xb0] sm:$0xff]  ;;  %270 = vmatpush.msra.mxu1 %v243_v7  ;;  %v241_v9 = vld [vmem:[#allocation5 + $0xe8] sm:$0xff] }
  0x3e   :  { %251 = vmatpush.msra.mxu0 %v240_v1  ;;  %311 = vmatpush.msra.mxu2 %v306_v4  ;;  %v305_v6 = vld [vmem:[#allocation8 + $0x70] sm:$0xff]  ;;  %v304_v8 = vld [vmem:[#allocation8 + $0x68] sm:$0xff]  ;;  %v232_v10 = vld [vmem:[#allocation5 + $0xa0] sm:$0xff] }
  0x3f   :  { %v239_v11 = vld [vmem:[#allocation5 + $0xd8] sm:$0xff]  ;;  %v303_v12 = vld [vmem:[#allocation8 + $0x60] sm:$0xff]  ;;  %271 = vmatpush.msra.mxu1 %v241_v9  ;;  %v230_v13 = vld [vmem:[#allocation5 + $0x90] sm:$0xff] }
  0x40   :  { %252 = vmatpush.msra.mxu0 %v238_v2  ;;  %312 = vmatpush.msra.mxu2 %v305_v6  ;;  %v237_v14 = vld [vmem:[#allocation5 + $0xc8] sm:$0xff]  ;;  %v228_v15 = vld [vmem:[#allocation5 + $0x80] sm:$0xff]  ;;  %v226_v17 = vld [vmem:[#allocation5 + $0x70] sm:$0xff] }
  0x41   :  { %v302_v16 = vld [vmem:[#allocation8 + $0x58] sm:$0xff]  ;;  %272 = vmatpush.msra.mxu1 %v239_v11  ;;  %v301_v18 = vld [vmem:[#allocation8 + $0x50] sm:$0xff]  ;;  %v300_v20 = vld [vmem:[#allocation8 + $0x48] sm:$0xff] }
  0x42   :  { %253 = vmatpush.msra.mxu0 %v236_v3  ;;  %313 = vmatpush.msra.mxu2 %v304_v8  ;;  %v235_v19 = vld [vmem:[#allocation5 + $0xb8] sm:$0xff]  ;;  %v233_v21 = vld [vmem:[#allocation5 + $0xa8] sm:$0xff]  ;;  %v224_v22 = vld [vmem:[#allocation5 + $0x60] sm:$0xff]  ;;  %s670_s1 = sshll.u32 %s1231_s20, 4  ;;  %s671_s1 = int_to_ptr.hbm [resolvable:$true] %s670_s1 }
  0x43   :  { %273 = vmatpush.msra.mxu1 %v237_v14  ;;  %v231_v23 = vld [vmem:[#allocation5 + $0x98] sm:$0xff]  ;;  %v299_v24 = vld [vmem:[#allocation8 + $0x40] sm:$0xff]  ;;  %v222_v25 = vld [vmem:[#allocation5 + $0x50] sm:$0xff] }
  0x44   :  { %254 = vmatpush.msra.mxu0 %v234_v5  ;;  %314 = vmatpush.msra.mxu2 %v303_v12  ;;  %v229_v26 = vld [vmem:[#allocation5 + $0x88] sm:$0xff]  ;;  %v298_v27 = vld [vmem:[#allocation8 + $0x38] sm:$0xff]  ;;  %v297_v30 = vld [vmem:[#allocation8 + $0x30] sm:$0xff] }
  0x45   :  { %274 = vmatpush.msra.mxu1 %v235_v19  ;;  %v220_v28 = vld [vmem:[#allocation5 + $0x40] sm:$0xff]  ;;  %v227_v29 = vld [vmem:[#allocation5 + $0x78] sm:$0xff]  ;;  %v218_v31 = vld [vmem:[#allocation5 + $0x30] sm:$0xff] }
  0x46   :  { %255 = vmatpush.msra.mxu0 %v232_v10  ;;  %315 = vmatpush.msra.mxu2 %v302_v16  ;;  %v225_v32 = vld [vmem:[#allocation5 + $0x68] sm:$0xff]  ;;  %v216_v34 = vld [vmem:[#allocation5 + $0x20] sm:$0xff]  ;;  %v214_v36 = vld [vmem:[#allocation5 + $0x10] sm:$0xff] }
  0x47   :  { %275 = vmatpush.msra.mxu1 %v233_v21  ;;  %v296_v33 = vld [vmem:[#allocation8 + $0x28] sm:$0xff]  ;;  %v295_v35 = vld [vmem:[#allocation8 + $0x20] sm:$0xff]  ;;  %v294_v37 = vld [vmem:[#allocation8 + $0x18] sm:$0xff] }
  0x48   :  { %256 = vmatpush.msra.mxu0 %v230_v13  ;;  %316 = vmatpush.msra.mxu2 %v301_v18  ;;  %v212_v38 = vld [vmem:[#allocation5] sm:$0xff]  ;;  %v211_v39 = vld [vmem:[#allocation2] sm:$0xff]  ;;  %v221_v42 = vld [vmem:[#allocation5 + $0x48] sm:$0xff] }
  0x49   :  { %276 = vmatpush.msra.mxu1 %v231_v23  ;;  %v223_v40 = vld [vmem:[#allocation5 + $0x58] sm:$0xff]  ;;  %v292_v43 = vld [vmem:[#allocation8 + $0x8] sm:$0xff]  ;;  %v291_v45 = vld [vmem:[#allocation8] sm:$0xff] }
  0x4a   :  { %257 = vmatpush.msra.mxu0 %v228_v15  ;;  %317 = vmatpush.msra.mxu2 %v300_v20  ;;  %v293_v41 = vld [vmem:[#allocation8 + $0x10] sm:$0xff]  ;;  %v217_v46 = vld [vmem:[#allocation5 + $0x28] sm:$0xff]  ;;  %v244_v49 = vld [vmem:[#allocation7] sm:$0x3] }
  0x4b   :  { %277 = vmatpush.msra.mxu1 %v229_v26  ;;  %v219_v44 = vld [vmem:[#allocation5 + $0x38] sm:$0xff]  ;;  %v213_v48 = vld [vmem:[#allocation5 + $0x8] sm:$0xff]  ;;  %v246_v50 = vperm.slane %v244_v49, 0  ;;  %v247_v54 = vperm.slane %v244_v49, 1  ;;  %v700_v56 = vld [vmem:[#allocation10] ss:$0 sm:$0xff] }
  0x4c   :  { %258 = vmatpush.msra.mxu0 %v226_v17  ;;  %318 = vmatpush.msra.mxu2 %v299_v24  ;;  %v215_v47 = vld [vmem:[#allocation5 + $0x18] sm:$0xff]  ;;  %v390_v63 = vld [vmem:[#allocation13 + $0xe0] sm:$0xff]  ;;  %v391_v0 = vld [vmem:[#allocation13 + $0xe8] sm:$0xff] }
  0x4d   :  { %278 = vmatpush.msra.mxu1 %v227_v29  ;;  %v392_v61 = vld [vmem:[#allocation13 + $0xf0] sm:$0xff]  ;;  %v393_v62 = vld [vmem:[#allocation13 + $0xf8] sm:$0xff]  ;;  %v386_v7 = vld [vmem:[#allocation13 + $0xc0] sm:$0xff] }
  0x4e   :  { %259 = vmatpush.msra.mxu0 %v224_v22  ;;  %319 = vmatpush.msra.mxu2 %v298_v27  ;;  %v388_v5 = vld [vmem:[#allocation13 + $0xd0] sm:$0xff]  ;;  %v389_v6 = vld [vmem:[#allocation13 + $0xd8] sm:$0xff]  ;;  %v387_v8 = vld [vmem:[#allocation13 + $0xc8] sm:$0xff] }
  0x4f   :  { %279 = vmatpush.msra.mxu1 %v225_v32  ;;  %400 = vmatpush.msra.mxu3 %v392_v61  ;;  %v384_v9 = vld [vmem:[#allocation13 + $0xb0] sm:$0xff]  ;;  %v385_v10 = vld [vmem:[#allocation13 + $0xb8] sm:$0xff]  ;;  %v382_v11 = vld [vmem:[#allocation13 + $0xa0] sm:$0xff] }
  0x50   :  { %260 = vmatpush.msra.mxu0 %v222_v25  ;;  %320 = vmatpush.msra.mxu2 %v297_v30  ;;  %v383_v12 = vld [vmem:[#allocation13 + $0xa8] sm:$0xff]  ;;  %v380_v13 = vld [vmem:[#allocation13 + $0x90] sm:$0xff]  ;;  %v381_v14 = vld [vmem:[#allocation13 + $0x98] sm:$0xff] }
  0x51   :  { %280 = vmatpush.msra.mxu1 %v223_v40  ;;  %401 = vmatpush.msra.mxu3 %v390_v63  ;;  %v378_v15 = vld [vmem:[#allocation13 + $0x80] sm:$0xff]  ;;  %v379_v16 = vld [vmem:[#allocation13 + $0x88] sm:$0xff]  ;;  %v376_v17 = vld [vmem:[#allocation13 + $0x70] sm:$0xff] }
  0x52   :  { %261 = vmatpush.msra.mxu0 %v220_v28  ;;  %321 = vmatpush.msra.mxu2 %v296_v33  ;;  %v377_v18 = vld [vmem:[#allocation13 + $0x78] sm:$0xff]  ;;  %v374_v19 = vld [vmem:[#allocation13 + $0x60] sm:$0xff]  ;;  %v375_v20 = vld [vmem:[#allocation13 + $0x68] sm:$0xff] }
  0x53   :  { %281 = vmatpush.msra.mxu1 %v221_v42  ;;  %402 = vmatpush.msra.mxu3 %v388_v5  ;;  %v372_v21 = vld [vmem:[#allocation13 + $0x50] sm:$0xff]  ;;  %v373_v22 = vld [vmem:[#allocation13 + $0x58] sm:$0xff]  ;;  %v370_v23 = vld [vmem:[#allocation13 + $0x40] sm:$0xff] }
  0x54   :  { %262 = vmatpush.msra.mxu0 %v218_v31  ;;  %322 = vmatpush.msra.mxu2 %v295_v35  ;;  %v371_v24 = vld [vmem:[#allocation13 + $0x48] sm:$0xff]  ;;  %v368_v25 = vld [vmem:[#allocation13 + $0x30] sm:$0xff]  ;;  %v369_v26 = vld [vmem:[#allocation13 + $0x38] sm:$0xff] }
  0x55   :  { %282 = vmatpush.msra.mxu1 %v219_v44  ;;  %403 = vmatpush.msra.mxu3 %v386_v7  ;;  %v366_v27 = vld [vmem:[#allocation13 + $0x20] sm:$0xff]  ;;  %v367_v28 = vld [vmem:[#allocation13 + $0x28] sm:$0xff]  ;;  %v364_v29 = vld [vmem:[#allocation13 + $0x10] sm:$0xff] }
  0x56   :  { %263 = vmatpush.msra.mxu0 %v216_v34  ;;  %323 = vmatpush.msra.mxu2 %v294_v37  ;;  %v365_v30 = vld [vmem:[#allocation13 + $0x18] sm:$0xff]  ;;  %v362_v31 = vld [vmem:[#allocation13] sm:$0xff]  ;;  %v363_v32 = vld [vmem:[#allocation13 + $0x8] sm:$0xff] }
  0x57   :  { %283 = vmatpush.msra.mxu1 %v217_v46  ;;  %404 = vmatpush.msra.mxu3 %v384_v9  ;;  %v456_v33 = vld [vmem:[#allocation14 + $0x78] sm:$0xff]  ;;  %v455_v34 = vld [vmem:[#allocation14 + $0x70] sm:$0xff]  ;;  %v454_v35 = vld [vmem:[#allocation14 + $0x68] sm:$0xff] }
  0x58   :  { %264 = vmatpush.msra.mxu0 %v214_v36  ;;  %324 = vmatpush.msra.mxu2 %v293_v41  ;;  %v452_v40 = vld [vmem:[#allocation14 + $0x58] sm:$0xff]  ;;  %v451_v41 = vld [vmem:[#allocation14 + $0x50] sm:$0xff]  ;;  %v450_v42 = vld [vmem:[#allocation14 + $0x48] sm:$0xff] }
  0x59   :  { %284 = vmatpush.msra.mxu1 %v215_v47  ;;  %405 = vmatpush.msra.mxu3 %v382_v11  ;;  %v447_v47 = vld [vmem:[#allocation14 + $0x30] sm:$0xff]  ;;  %v441_v63 = vld [vmem:[#allocation14] sm:$0xff] }
  0x5a   :  { %265 = vmatpush.msra.mxu0 %v212_v38  ;;  %325 = vmatpush.msra.mxu2 %v292_v43  ;;  %v453_v38 = vld [vmem:[#allocation14 + $0x60] sm:$0xff]  ;;  %v443_v61 = vld [vmem:[#allocation14 + $0x10] sm:$0xff] }
  0x5b   :  { %266 = vmatmul.f32.vlgmr.msra.gmra.mxu0 %v211_v39  ;;  %285 = vmatpush.msra.mxu1 %v213_v48  ;;  %v449_v43 = vld [vmem:[#allocation14 + $0x40] sm:$0xff] }
  0x5c   :  { %326 = vmatpush.msra.mxu2 %v291_v45  ;;  %286 = vmatmul.f32.vlgmr.msra.gmra.mxu1 %v211_v39  ;;  %v448_v45 = vld [vmem:[#allocation14 + $0x38] sm:$0xff] }
  0x5d   :  { %420 = vmatpush.msrb.mxu0 %v393_v62  ;;  %406 = vmatpush.msra.mxu3 %v380_v13  ;;  %v442_v62 = vld [vmem:[#allocation14 + $0x8] sm:$0xff]  ;;  %v543_v13 = vld [vmem:[#allocation16 + $0xf8] sm:$0xff] }
  0x5e   :  { %461 = vmatpush.msrb.mxu1 %v456_v33  ;;  %v527_v33 = vld [vmem:[#allocation16 + $0x78] sm:$0xff] }
  0x5f   :  { %421 = vmatpush.msrb.mxu0 %v391_v0  ;;  %407 = vmatpush.msra.mxu3 %v378_v15  ;;  %v394_v0 = vld [vmem:[%s1202_s8] sm:$0x3]  ;;  %v541_v15 = vld [vmem:[#allocation16 + $0xe8] sm:$0xff] }
  0x60   :  { %462 = vmatpush.msrb.mxu1 %v455_v34  ;;  %v397_v5 = vperm.slane %v394_v0, 1  ;;  %v524_v34 = vld [vmem:[#allocation16 + $0x60] sm:$0xff] }
  0x61   :  { %422 = vmatpush.msrb.mxu0 %v389_v6  ;;  %408 = vmatpush.msra.mxu3 %v376_v17  ;;  %v703_v6 = vld [vmem:[%s1204_s10] ss:$0 sm:$0xff] }
  0x62   :  { %463 = vmatpush.msrb.mxu1 %v454_v35  ;;  %v525_v35 = vld [vmem:[#allocation16 + $0x68] sm:$0xff] }
  0x63   :  { %423 = vmatpush.msrb.mxu0 %v387_v8  ;;  %409 = vmatpush.msra.mxu3 %v374_v19 }
  0x64   :  { %464 = vmatpush.msrb.mxu1 %v453_v38  ;;  %v520_v38 = vld [vmem:[#allocation16 + $0x40] sm:$0xff] }
  0x65   :  { %424 = vmatpush.msrb.mxu0 %v385_v10  ;;  %410 = vmatpush.msra.mxu3 %v372_v21  ;;  %v539_v21 = vld [vmem:[#allocation16 + $0xd8] sm:$0xff] }
  0x66   :  { %465 = vmatpush.msrb.mxu1 %v452_v40  ;;  %v518_v40 = vld [vmem:[#allocation16 + $0x30] sm:$0xff] }
  0x67   :  { %425 = vmatpush.msrb.mxu0 %v383_v12  ;;  %411 = vmatpush.msra.mxu3 %v370_v23  ;;  %v542_v12 = vld [vmem:[#allocation16 + $0xf0] sm:$0xff]  ;;  %v537_v23 = vld [vmem:[#allocation16 + $0xc8] sm:$0xff] }
  0x68   :  { %466 = vmatpush.msrb.mxu1 %v451_v41  ;;  %550 = vmatpush.msrb.mxu2 %v542_v12  ;;  %v519_v41 = vld [vmem:[#allocation16 + $0x38] sm:$0xff]  ;;  %v593_v12 = vld [vmem:[#allocation17 + $0x10] sm:$0xff] }
  0x69   :  { %426 = vmatpush.msrb.mxu0 %v381_v14  ;;  %412 = vmatpush.msra.mxu3 %v368_v25  ;;  %v540_v14 = vld [vmem:[#allocation16 + $0xe0] sm:$0xff]  ;;  %v535_v25 = vld [vmem:[#allocation16 + $0xb8] sm:$0xff] }
  0x6a   :  { %467 = vmatpush.msrb.mxu1 %v450_v42  ;;  %551 = vmatpush.msrb.mxu2 %v540_v14  ;;  %v516_v42 = vld [vmem:[#allocation16 + $0x20] sm:$0xff] }
  0x6b   :  { %427 = vmatpush.msrb.mxu0 %v379_v16  ;;  %413 = vmatpush.msra.mxu3 %v366_v27  ;;  %v533_v27 = vld [vmem:[#allocation16 + $0xa8] sm:$0xff]  ;;  %v591_v14 = vld [vmem:[#allocation17] sm:$0xff] }
  0x6c   :  { %468 = vmatpush.msrb.mxu1 %v449_v43  ;;  %v517_v43 = vld [vmem:[#allocation16 + $0x28] sm:$0xff] }
  0x6d   :  { %428 = vmatpush.msrb.mxu0 %v377_v18  ;;  %414 = vmatpush.msra.mxu3 %v364_v29  ;;  %v531_v29 = vld [vmem:[#allocation16 + $0x98] sm:$0xff] }
  0x6e   :  { %469 = vmatpush.msrb.mxu1 %v448_v45  ;;  %v515_v45 = vld [vmem:[#allocation16 + $0x18] sm:$0xff] }
  0x6f   :  { %429 = vmatpush.msrb.mxu0 %v375_v20  ;;  %415 = vmatpush.msra.mxu3 %v362_v31  ;;  %v538_v20 = vld [vmem:[#allocation16 + $0xd0] sm:$0xff]  ;;  %v529_v31 = vld [vmem:[#allocation16 + $0x88] sm:$0xff] }
  0x70   :  { %470 = vmatpush.msrb.mxu1 %v447_v47  ;;  %552 = vmatpush.msrb.mxu2 %v538_v20  ;;  %v513_v47 = vld [vmem:[#allocation16 + $0x8] sm:$0xff] }
  0x71   :  { %430 = vmatpush.msrb.mxu0 %v373_v22  ;;  %570 = vmatpush.msrb.mxu3 %v543_v13  ;;  %v536_v22 = vld [vmem:[#allocation16 + $0xc0] sm:$0xff]  ;;  %v592_v13 = vld [vmem:[#allocation17 + $0x8] sm:$0xff] }
  0x72   :  { %553 = vmatpush.msrb.mxu2 %v536_v22 }
  0x73   :  { %431 = vmatpush.msrb.mxu0 %v371_v24  ;;  %571 = vmatpush.msrb.mxu3 %v541_v15  ;;  %v534_v24 = vld [vmem:[#allocation16 + $0xb0] sm:$0xff] }
  0x74   :  { %554 = vmatpush.msrb.mxu2 %v534_v24  ;;  %v544_v15 = vld [vmem:[%s1208_s14] sm:$0x3] }
  0x75   :  { %432 = vmatpush.msrb.mxu0 %v369_v26  ;;  %572 = vmatpush.msrb.mxu3 %v539_v21  ;;  %v532_v26 = vld [vmem:[#allocation16 + $0xa0] sm:$0xff]  ;;  %v547_v20 = vperm.slane %v544_v15, 1  ;;  %v706_v21 = vld [vmem:[%s1210_s16] ss:$0 sm:$0xff] }
  0x76   :  { %555 = vmatpush.msrb.mxu2 %v532_v26 }
  0x77   :  { %433 = vmatpush.msrb.mxu0 %v367_v28  ;;  %573 = vmatpush.msrb.mxu3 %v537_v23  ;;  %v530_v28 = vld [vmem:[#allocation16 + $0x90] sm:$0xff] }
  0x78   :  { %556 = vmatpush.msrb.mxu2 %v530_v28 }
  0x79   :  { %434 = vmatpush.msrb.mxu0 %v365_v30  ;;  %574 = vmatpush.msrb.mxu3 %v535_v25  ;;  %v528_v30 = vld [vmem:[#allocation16 + $0x80] sm:$0xff] }
  0x7a   :  { %557 = vmatpush.msrb.mxu2 %v528_v30 }
  0x7b   :  { %435 = vmatpush.msrb.mxu0 %v363_v32  ;;  %575 = vmatpush.msrb.mxu3 %v533_v27  ;;  %v526_v32 = vld [vmem:[#allocation16 + $0x70] sm:$0xff] }
  0x7c   :  { %558 = vmatpush.msrb.mxu2 %v526_v32 }
  0x7d   :  { %576 = vmatpush.msrb.mxu3 %v531_v29 }
  0x7e   :  { %559 = vmatpush.msrb.mxu2 %v524_v34 }
  0x7f   :  { %577 = vmatpush.msrb.mxu3 %v529_v31 }
  0x81   :  { %578 = vmatpush.msrb.mxu3 %v527_v33 }
  0x83   :  { %579 = vmatpush.msrb.mxu3 %v525_v35 }
  0xd8   :  { %v267_v51 = vpop.f32.mrf.mxu0 }
  0xd9   :  { %v268_v52 = vadd.f32 %v267_v51, %v246_v50  ;;  %v287_v55 = vpop.f32.mrf.mxu1 }
  0xda   :  { %v288_v57 = vadd.f32 %v287_v55, %v247_v54  ;;  %v702_v55 = vld [vmem:[%s1200_s6] ss:$0 sm:$0xff] }
  0xdb   :  { %v290_v53 = vmax.f32 %v268_v52, 0.0  ;;  %v701_v52 = vld [vmem:[#allocation11] ss:$0 sm:$0xff] }
  0xdd   :  { %327 = vmatmul.f32.vlgmr.msra.gmra.mxu2 %v290_v53 }
 0x160   :  { %v328_v58 = vpop.f32.mrf.mxu2 }
 0x161   :  { %v329_v59 = vadd.f32 %v700_v56, %v328_v58  ;;  %v446_v58 = vld [vmem:[#allocation14 + $0x28] sm:$0xff] }
 0x162   :  { %471 = vmatpush.msrb.mxu1 %v446_v58  ;;  %v599_v58 = vld [vmem:[#allocation17 + $0x40] sm:$0xff] }
 0x163   :  { %v331_v60 = vadd.f32 %v329_v59, %v288_v57  ;;  %v445_v59 = vld [vmem:[#allocation14 + $0x20] sm:$0xff] }
 0x164   :  { %472 = vmatpush.msrb.mxu1 %v445_v59 }
 0x165   :  { %332 = vadd.xlane.f32.xlu0 %v331_v60 }
 0x1d8   :  { %v333_v1 = vpop.xlane.xlu0 %332 }
 0x1d9   :  { %v334_v2 = vmul.f32 0.03125, %v333_v1  ;;  %v396_v1 = vperm.slane %v394_v0, 0  ;;  %v596_v0 = vld [vmem:[#allocation17 + $0x28] sm:$0xff] }
 0x1db   :  { %v1156_v3 = vsub.f32 %v331_v60, %v334_v2 }
 0x1dd   :  { %v336_v4 = vmul.f32 %v1156_v3, %v331_v60  ;;  %v444_v60 = vld [vmem:[#allocation14 + $0x18] sm:$0xff] }
 0x1de   :  { %473 = vmatpush.msrb.mxu1 %v444_v60  ;;  %v598_v60 = vld [vmem:[#allocation17 + $0x38] sm:$0xff] }
 0x1df   :  { %337 = vadd.xlane.f32.xlu0 %v336_v4 }
 0x1e0   :  { %474 = vmatpush.msrb.mxu1 %v443_v61 }
 0x1e2   :  { %475 = vmatpush.msrb.mxu1 %v442_v62  ;;  %v597_v62 = vld [vmem:[#allocation17 + $0x30] sm:$0xff] }
 0x1e4   :  { %476 = vmatpush.msrb.mxu1 %v441_v63 }
 0x252   :  { %v338_v36 = vpop.xlane.xlu0 %337 }
 0x253   :  { %v339_v37 = vmul.f32 0.03125, %v338_v36  ;;  %v522_v36 = vld [vmem:[#allocation16 + $0x50] sm:$0xff] }
 0x254   :  { %560 = vmatpush.msrb.mxu2 %v522_v36 }
 0x255   :  { %v340_v39 = vadd.f32 1e-05, %v339_v37  ;;  %v523_v37 = vld [vmem:[#allocation16 + $0x58] sm:$0xff] }
 0x256   :  { %580 = vmatpush.msrb.mxu3 %v523_v37  ;;  %561 = vmatpush.msrb.mxu2 %v520_v38 }
 0x257   :  { %709 = vrsqrt.f32 %v340_v39  ;;  %vm347_vm1 = vweird.f32 %v340_v39 }
 0x258   :  { %562 = vmatpush.msrb.mxu2 %v518_v40  ;;  %v707_v40 = vld [vmem:[%s1211_s17] ss:$0 sm:$0xff] }
 0x25a   :  { %563 = vmatpush.msrb.mxu2 %v516_v42 }
 0x25d   :  { %v710_v44 = vpop.eup %709 }
 0x25e   :  { %v342_v46 = vmul.f32 %v710_v44, %v340_v39  ;;  %vm348_vm0 = vweird.f32 %v710_v44  ;;  %v521_v39 = vld [vmem:[#allocation16 + $0x48] sm:$0xff] }
 0x25f   :  { %vm349_vm2 = vmor %vm347_vm1, %vm348_vm0  ;;  %581 = vmatpush.msrb.mxu3 %v521_v39 }
 0x260   :  { %v343_v48 = vmul.f32 %v710_v44, %v342_v46  ;;  %v512_v46 = vld [vmem:[#allocation16] sm:$0xff] }
 0x261   :  { %582 = vmatpush.msrb.mxu3 %v519_v41 }
 0x262   :  { %v344_v49 = vmul.f32 0.5, %v343_v48  ;;  %v606_v48 = vld [vmem:[#allocation17 + $0x78] sm:$0xff] }
 0x263   :  { %583 = vmatpush.msrb.mxu3 %v517_v43  ;;  %611 = vmatpush.msra.mxu0 %v606_v48  ;;  %v708_v43 = vld [vmem:[%s1230_s28] ss:$0 sm:$0xff] }
 0x264   :  { %v345_v50 = vsub.f32 1.5, %v344_v49  ;;  %v605_v49 = vld [vmem:[#allocation17 + $0x70] sm:$0xff] }
 0x265   :  { %584 = vmatpush.msrb.mxu3 %v515_v45  ;;  %612 = vmatpush.msra.mxu0 %v605_v49 }
 0x266   :  { %v346_v51 = vmul.f32 %v710_v44, %v345_v50  ;;  %v604_v50 = vld [vmem:[#allocation17 + $0x68] sm:$0xff] }
 0x267   :  { %585 = vmatpush.msrb.mxu3 %v513_v47  ;;  %613 = vmatpush.msra.mxu0 %v604_v50 }
 0x268   :  { %v350_v53 = vsel %vm349_vm2, %v710_v44, %v346_v51  ;;  %v514_v44 = vld [vmem:[#allocation16 + $0x10] sm:$0xff] }
 0x269   :  { %v351_v54 = vmul.f32 %v350_v53, %v1156_v3  ;;  %564 = vmatpush.msrb.mxu2 %v514_v44  ;;  %v603_v53 = vld [vmem:[#allocation17 + $0x60] sm:$0xff] }
 0x26a   :  { %614 = vmatpush.msra.mxu0 %v603_v53 }
 0x26b   :  { %v356_v56 = vmul.f32 %v701_v52, %v351_v54  ;;  %565 = vmatpush.msrb.mxu2 %v512_v46 }
 0x26d   :  { %v361_v57 = vadd.f32 %v702_v55, %v356_v56  ;;  %v602_v55 = vld [vmem:[#allocation17 + $0x58] sm:$0xff]  ;;  %v601_v56 = vld [vmem:[#allocation17 + $0x50] sm:$0xff] }
 0x26e   :  { %615 = vmatpush.msra.mxu0 %v602_v55 }
 0x26f   :  { %416 = vmatmul.f32.vlgmr.msra.gmra.mxu3 %v361_v57  ;;  %436 = vmatmul.f32.vlgmr.msrb.gmra.mxu0 %v361_v57  ;;  %v600_v57 = vld [vmem:[#allocation17 + $0x48] sm:$0xff] }
 0x270   :  { %616 = vmatpush.msra.mxu0 %v601_v56 }
 0x272   :  { %617 = vmatpush.msra.mxu0 %v600_v57 }
 0x274   :  { %618 = vmatpush.msra.mxu0 %v599_v58 }
 0x276   :  { %619 = vmatpush.msra.mxu0 %v598_v60 }
 0x278   :  { %620 = vmatpush.msra.mxu0 %v597_v62 }
 0x27a   :  { %621 = vmatpush.msra.mxu0 %v596_v0 }
 0x2ec   :  { %v437_v7 = vpop.f32.mrf.mxu0 }
 0x2ed   :  { %v438_v9 = vadd.f32 %v437_v7, %v397_v5 }
 0x2f2   :  { %v417_v2 = vpop.f32.mrf.mxu3 }
 0x2f3   :  { %v418_v3 = vadd.f32 %v417_v2, %v396_v1  ;;  %v595_v2 = vld [vmem:[#allocation17 + $0x20] sm:$0xff] }
 0x2f4   :  { %622 = vmatpush.msra.mxu0 %v595_v2 }
 0x2f5   :  { %v440_v4 = vmax.f32 %v418_v3, 0.0 }
 0x2f7   :  { %477 = vmatmul.f32.vlgmr.msrb.gmra.mxu1 %v440_v4  ;;  %v594_v4 = vld [vmem:[#allocation17 + $0x18] sm:$0xff] }
 0x2f8   :  { %623 = vmatpush.msra.mxu0 %v594_v4 }
 0x2fa   :  { %624 = vmatpush.msra.mxu0 %v593_v12 }
 0x2fc   :  { %625 = vmatpush.msra.mxu0 %v592_v13 }
 0x2fe   :  { %626 = vmatpush.msra.mxu0 %v591_v14 }
 0x374   :  { %v478_v8 = vpop.f32.mrf.mxu1 }
 0x375   :  { %v479_v10 = vadd.f32 %v703_v6, %v478_v8  ;;  %v704_v6 = vld [vmem:[%s1205_s11] ss:$0 sm:$0xff] }
 0x377   :  { %v481_v11 = vadd.f32 %v479_v10, %v438_v9  ;;  %v705_v9 = vld [vmem:[%s1206_s12] ss:$0 sm:$0xff] }
 0x379   :  { %482 = vadd.xlane.f32.xlu1 %v481_v11 }
 0x3ec   :  { %v483_v16 = vpop.xlane.xlu1 %482 }
 0x3ed   :  { %v484_v17 = vmul.f32 0.03125, %v483_v16  ;;  %v546_v16 = vperm.slane %v544_v15, 0 }
 0x3ef   :  { %v1169_v18 = vsub.f32 %v481_v11, %v484_v17 }
 0x3f1   :  { %v486_v19 = vmul.f32 %v1169_v18, %v481_v11 }
 0x3f3   :  { %487 = vadd.xlane.f32.xlu1 %v486_v19 }
 0x466   :  { %v488_v51 = vpop.xlane.xlu1 %487 }
 0x467   :  { %v489_v52 = vmul.f32 0.03125, %v488_v51 }
 0x469   :  { %v490_v54 = vadd.f32 1e-05, %v489_v52 }
 0x46b   :  { %711 = vrsqrt.f32 %v490_v54  ;;  %vm497_vm4 = vweird.f32 %v490_v54 }
 0x471   :  { %v712_v59 = vpop.eup %711 }
 0x472   :  { %v492_v61 = vmul.f32 %v712_v59, %v490_v54  ;;  %vm498_vm3 = vweird.f32 %v712_v59 }
 0x473   :  { %vm499_vm5 = vmor %vm497_vm4, %vm498_vm3 }
 0x474   :  { %v493_v63 = vmul.f32 %v712_v59, %v492_v61 }
 0x476   :  { %v494_v1 = vmul.f32 0.5, %v493_v63 }
 0x478   :  { %v495_v3 = vsub.f32 1.5, %v494_v1 }
 0x47a   :  { %v496_v5 = vmul.f32 %v712_v59, %v495_v3 }
 0x47c   :  { %v500_v7 = vsel %vm499_vm5, %v712_v59, %v496_v5 }
 0x47d   :  { %v501_v8 = vmul.f32 %v500_v7, %v1169_v18 }
 0x47f   :  { %v506_v10 = vmul.f32 %v704_v6, %v501_v8 }
 0x481   :  { %v511_v11 = vadd.f32 %v705_v9, %v506_v10 }
 0x483   :  { %566 = vmatmul.f32.vlgmr.msrb.gmra.mxu2 %v511_v11  ;;  %586 = vmatmul.f32.vlgmr.msrb.gmra.mxu3 %v511_v11 }
 0x506   :  { %v567_v17 = vpop.f32.mrf.mxu2  ;;  %v587_v22 = vpop.f32.mrf.mxu3 }
 0x507   :  { %v568_v18 = vadd.f32 %v567_v17, %v546_v16  ;;  %v588_v24 = vadd.f32 %v587_v22, %v547_v20 }
 0x509   :  { %v590_v19 = vmax.f32 %v568_v18, 0.0 }
 0x50b   :  { %627 = vmatmul.f32.vlgmr.msra.gmra.mxu0 %v590_v19 }
 0x588   :  { %v628_v23 = vpop.f32.mrf.mxu0 }
 0x589   :  { %v629_v25 = vadd.f32 %v706_v21, %v628_v23 }
 0x58b   :  { %v631_v26 = vadd.f32 %v629_v25, %v588_v24 }
 0x58d   :  { %632 = vadd.xlane.f32.xlu2 %v631_v26 }
 0x600   :  { %v633_v27 = vpop.xlane.xlu2 %632 }
 0x601   :  { %v634_v28 = vmul.f32 0.041666668, %v633_v27 }
 0x603   :  { %v635_v29 = vsub.f32 %v631_v26, %v634_v28 }
 0x605   :  { %v636_v30 = vmul.f32 %v635_v29, %v631_v26 }
 0x607   :  { %637 = vadd.xlane.f32.xlu2 %v636_v30 }
 0x67a   :  { %v638_v31 = vpop.xlane.xlu2 %637 }
 0x67b   :  { %v639_v32 = vmul.f32 0.041666668, %v638_v31 }
 0x67d   :  { %v640_v33 = vadd.f32 1e-05, %v639_v32 }
 0x67f   :  { %713 = vrsqrt.f32 %v640_v33  ;;  %vm647_vm7 = vweird.f32 %v640_v33 }
 0x685   :  { %v714_v34 = vpop.eup %713 }
 0x686   :  { %v642_v35 = vmul.f32 %v714_v34, %v640_v33  ;;  %vm648_vm6 = vweird.f32 %v714_v34 }
 0x687   :  { %vm649_vm8 = vmor %vm647_vm7, %vm648_vm6 }
 0x688   :  { %v643_v36 = vmul.f32 %v714_v34, %v642_v35 }
 0x68a   :  { %v644_v37 = vmul.f32 0.5, %v643_v36 }
 0x68c   :  { %v645_v38 = vsub.f32 1.5, %v644_v37 }
 0x68e   :  { %v646_v39 = vmul.f32 %v714_v34, %v645_v38 }
 0x690   :  { %v650_v41 = vsel %vm649_vm8, %v714_v34, %v646_v39 }
 0x691   :  { %v651_v42 = vmul.f32 %v650_v41, %v635_v29 }
 0x693   :  { %v656_v44 = vmul.f32 %v707_v40, %v651_v42 }
 0x695   :  { %v661_v45 = vadd.f32 %v708_v43, %v656_v44 }
 0x697   :  { %662 = vst [vmem:[#allocation19] sm:$0xff] %v661_v45 }
 0x698   :  { %673 = dma.vmem_to_hbm [thread:$0]  %s669_s2, 128, %s671_s1, [#allocation4]  }
 0x699   :  { %991 = dma.done.wait [#allocation4], 128  }
 0x69a   :  { %992 = vsyncadd [#allocation4], 4294967168 }
 0x69b   :  { %678 = vsyncpa [#allocation3], 1 }
 0x69c   :  { %679 = vsyncpa [#allocation6], 1 }
 0x69d   :  { %680 = vsyncpa [#allocation9], 1 }
 0x69e   :  { %681 = vsyncpa [#allocation12], 1 }
 0x69f   :  { %682 = vsyncpa [#allocation15], 1 }
 0x6a0   :  { %683 = vsyncpa [#allocation18], 1 }
 0x6a1   :  { %684 = vsyncpa [#allocation4], 1 }

// kernel: tpu_custom_call.1
= control target key start
LH: loop header
LB: loop body
LE: loop exit
PB: predicated region body
PF: predicated region fallthrough
CT: control target
= control target key end

     0   :  { %s1194_s0 = inlined_call_operand.hbm [shape: f32[8,128], index: 0, kind: input, shape index: {}]   ;;  %s1195_s1 = inlined_call_operand.hbm [shape: f32[128,256], index: 1, kind: input, shape index: {}]   ;;  %s1196_s2 = inlined_call_operand.hbm [shape: f32[1,256], index: 2, kind: input, shape index: {}]   ;;  %s1197_s3 = inlined_call_operand.hbm [shape: f32[128,128], index: 3, kind: input, shape index: {}]   ;;  %s1198_s4 = inlined_call_operand.hbm [shape: f32[1,128], index: 4, kind: input, shape index: {}]   ;;  %s1199_s5 = inlined_call_operand.hbm [shape: f32[1,128], index: 5, kind: input, shape index: {}]   ;;  %s1200_s6 = inlined_call_operand.vmem [shape: f32[1,128], index: 6, kind: input, shape index: {}]   ;;  %s1201_s7 = inlined_call_operand.hbm [shape: f32[128,256], index: 7, kind: input, shape index: {}]   ;;  %s1202_s8 = inlined_call_operand.vmem [shape: f32[1,256], index: 8, kind: input, shape index: {}]   ;;  %s1203_s9 = inlined_call_operand.hbm [shape: f32[128,128], index: 9, kind: input, shape index: {}]   ;;  %s1204_s10 = inlined_call_operand.vmem [shape: f32[1,128], index: 10, kind: input, shape index: {}]   ;;  %s1205_s11 = inlined_call_operand.vmem [shape: f32[1,128], index: 11, kind: input, shape index: {}]   ;;  %s1206_s12 = inlined_call_operand.vmem [shape: f32[1,128], index: 12, kind: input, shape index: {}]   ;;  %s1207_s13 = inlined_call_operand.hbm [shape: f32[128,256], index: 13, kind: input, shape index: {}]   ;;  %s1208_s14 = inlined_call_operand.vmem [shape: f32[1,256], index: 14, kind: input, shape index: {}]   ;;  %s1209_s15 = inlined_call_operand.hbm [shape: f32[128,128], index: 15, kind: input, shape index: {}]   ;;  %s1210_s16 = inlined_call_operand.vmem [shape: f32[1,128], index: 16, kind: input, shape index: {}]   ;;  %s1211_s17 = inlined_call_operand.vmem [shape: f32[1,128], index: 17, kind: input, shape index: {}]   ;;  %s1212_s18 = inlined_call_operand.vmem [shape: f32[1,128], index: 18, kind: input, shape index: {}]   ;;  %s1213_s19 = inlined_call_operand.hbm [shape: f32[8,128], index: 19, kind: output, shape index: {}]  }
   0x1   :  { %1218 = sst [smem:[#allocation27_spill]] %s1194_s0 }
   0x2   :  { %1219 = sst [smem:[#allocation28_spill]] %s1195_s1 }
   0x3   :  { %1220 = sst [smem:[#allocation29_spill]] %s1196_s2 }
   0x4   :  { %1221 = sst [smem:[#allocation30_spill]] %s1197_s3 }
   0x5   :  { %1222 = sst [smem:[#allocation31_spill]] %s1212_s18 }
   0x6   :  { %1223 = sst [smem:[#allocation32_spill]] %s1213_s19 }
   0x7   :  { %24 = vsyncpa [#allocation3], 0 }
   0x8   :  { %25 = vsyncpa [#allocation6], 0 }
   0x9   :  { %26 = vsyncpa [#allocation9], 0 }
   0xa   :  { %27 = vsyncpa [#allocation12], 0 }
   0xb   :  { %28 = vsyncpa [#allocation15], 0 }
   0xc   :  { %29 = vsyncpa [#allocation18], 0  ;;  %s1224_s20 = sld [smem:[#allocation28_spill]] }
  0x12   :  { %s46_s21 = sshll.u32 %s1224_s20, 4  ;;  %s47_s21 = int_to_ptr.hbm [resolvable:$true] %s46_s21 }
  0x13   :  { %30 = vsyncpa [#allocation4], 0  ;;  %s993_s1 = smov [#allocation5]   ;;  %s1225_s24 = sld [smem:[#allocation30_spill]] }
  0x14   :  { %s48_s22 = sshll.u32 %s993_s1, 4  ;;  %s1214_s3 = smov 256   ;;  %s49_s22 = int_to_ptr.vmem [resolvable:$true] %s48_s22 }
  0x15   :  { %s1216_s26 = smov 16   ;;  %s996_s27 = smov [#allocation8]  }
  0x16   :  { %54 = dma.hbm_to_vmem [thread:$0]  %s47_s21, 4096, %s49_s22, [#allocation6], %s1214_s3, %s1214_s3, %s1216_s26  }
  0x17   :  { %s72_s28 = sshll.u32 %s996_s27, 4  ;;  %s997_s29 = smov 128   ;;  %s73_s28 = int_to_ptr.vmem [resolvable:$true] %s72_s28 }
  0x18   :  { %s998_s0 = smov 8   ;;  %s95_s1 = sshll.u32 %s1199_s5, 4  ;;  %s96_s1 = int_to_ptr.hbm [resolvable:$true] %s95_s1 }
  0x19   :  { %s70_s25 = sshll.u32 %s1225_s24, 4  ;;  %s999_s2 = smov [#allocation11]   ;;  %s71_s25 = int_to_ptr.hbm [resolvable:$true] %s70_s25 }
  0x1a   :  { %78 = dma.hbm_to_vmem [thread:$0]  %s71_s25, 2048, %s73_s28, [#allocation9], %s997_s29, %s997_s29, %s998_s0  }
  0x1b   :  { %s97_s23 = sshll.u32 %s999_s2, 4  ;;  %s122_s22 = sshll.u32 %s1203_s9, 4  ;;  %s98_s23 = int_to_ptr.vmem [resolvable:$true] %s97_s23  ;;  %s123_s22 = int_to_ptr.hbm [resolvable:$true] %s122_s22 }
  0x1c   :  { %100 = dma.hbm_to_vmem [thread:$0]  %s96_s1, 16, %s98_s23, [#allocation12]  }
  0x1d   :  { %s1000_s27 = smov [#allocation14]   ;;  %s1226_s18 = sld [smem:[#allocation27_spill]] }
  0x1e   :  { %s124_s3 = sshll.u32 %s1000_s27, 4  ;;  %s1227_s30 = sld [smem:[#allocation29_spill]]  ;;  %s125_s3 = int_to_ptr.vmem [resolvable:$true] %s124_s3 }
  0x1f   :  { %130 = dma.hbm_to_vmem [thread:$0]  %s123_s22, 2048, %s125_s3, [#allocation15], %s997_s29, %s997_s29, %s998_s0  }
  0x20   :  { %s1001_s2 = smov [#allocation2]   ;;  %s1002_s1 = smov [#allocation7]  }
  0x21   :  { %s38_s9 = sshll.u32 %s1001_s2, 4  ;;  %s62_s23 = sshll.u32 %s1002_s1, 4  ;;  %s39_s9 = int_to_ptr.vmem [resolvable:$true] %s38_s9  ;;  %s63_s23 = int_to_ptr.vmem [resolvable:$true] %s62_s23 }
  0x22   :  { %s107_s21 = sshll.u32 %s1201_s7, 4  ;;  %s1003_s22 = smov [#allocation10]   ;;  %s108_s21 = int_to_ptr.hbm [resolvable:$true] %s107_s21 }
  0x23   :  { %s36_s25 = sshll.u32 %s1226_s18, 4  ;;  %s84_s18 = sshll.u32 %s1198_s4, 4  ;;  %s37_s25 = int_to_ptr.hbm [resolvable:$true] %s36_s25  ;;  %s85_s18 = int_to_ptr.hbm [resolvable:$true] %s84_s18 }
  0x24   :  { %s60_s20 = sshll.u32 %s1227_s30, 4  ;;  %s86_s27 = sshll.u32 %s1003_s22, 4  ;;  %s61_s20 = int_to_ptr.hbm [resolvable:$true] %s60_s20  ;;  %s87_s27 = int_to_ptr.vmem [resolvable:$true] %s86_s27 }
  0x25   :  { %41 = dma.hbm_to_vmem [thread:$0]  %s37_s25, 128, %s39_s9, [#allocation3]  }
  0x26   :  { %65 = dma.hbm_to_vmem [thread:$0]  %s61_s20, 32, %s63_s23, [#allocation6]  }
  0x27   :  { %89 = dma.hbm_to_vmem [thread:$0]  %s85_s18, 16, %s87_s27, [#allocation9]  }
  0x28   :  { %s1004_s5 = smov [#allocation13]   ;;  %s141_s2 = sshll.u32 %s1207_s13, 4  ;;  %s142_s2 = int_to_ptr.hbm [resolvable:$true] %s141_s2 }
  0x29   :  { %s109_s25 = sshll.u32 %s1004_s5, 4  ;;  %s1228_s4 = smov 16   ;;  %s110_s25 = int_to_ptr.vmem [resolvable:$true] %s109_s25 }
  0x2a   :  { %s1229_s9 = smov 256   ;;  %s156_s7 = sshll.u32 %s1209_s15, 4  ;;  %s157_s7 = int_to_ptr.hbm [resolvable:$true] %s156_s7 }
  0x2b   :  { %115 = dma.hbm_to_vmem [thread:$0]  %s108_s21, 4096, %s110_s25, [#allocation12], %s1229_s9, %s1229_s9, %s1228_s4  }
  0x2c   :  { %s1005_s23 = smov [#allocation16]   ;;  %s1006_s19 = smov [#allocation17]  }
  0x2d   :  { %s143_s24 = sshll.u32 %s1005_s23, 4  ;;  %s158_s13 = sshll.u32 %s1006_s19, 4  ;;  %s144_s24 = int_to_ptr.vmem [resolvable:$true] %s143_s24  ;;  %s159_s13 = int_to_ptr.vmem [resolvable:$true] %s158_s13 }
  0x2e   :  { %149 = dma.hbm_to_vmem [thread:$0]  %s142_s2, 4096, %s144_s24, [#allocation15], %s1229_s9, %s1229_s9, %s1228_s4  }
  0x2f   :  { %164 = dma.hbm_to_vmem [thread:$0]  %s157_s7, 2048, %s159_s13, [#allocation18], %s997_s29, %s997_s29, %s998_s0  }
  0x30   :  { %979 = dma.done.wait [#allocation3], 128  }
  0x31   :  { %980 = vsyncadd [#allocation3], 4294967168 }
  0x32   :  { %981 = dma.done.wait [#allocation6], 4128  }
  0x33   :  { %982 = vsyncadd [#allocation6], 4294963168 }
  0x34   :  { %983 = dma.done.wait [#allocation9], 2064  }
  0x35   :  { %984 = vsyncadd [#allocation9], 4294965232 }
  0x36   :  { %985 = dma.done.wait [#allocation12], 4112  }
  0x37   :  { %986 = vsyncadd [#allocation12], 4294963184 }
  0x38   :  { %987 = dma.done.wait [#allocation15], 6144  }
  0x39   :  { %988 = vsyncadd [#allocation15], 4294961152 }
  0x3a   :  { %989 = dma.done.wait [#allocation18], 2048  }
  0x3b   :  { %990 = vsyncadd [#allocation18], 4294965248  ;;  %v242_v0 = vld [vmem:[#allocation5 + $0xf0] sm:$0xff]  ;;  %v240_v1 = vld [vmem:[#allocation5 + $0xe0] sm:$0xff]  ;;  %s1230_s28 = sld [smem:[#allocation31_spill]]  ;;  %s1007_s30 = smov [#allocation19]  }
  0x3c   :  { %250 = vmatpush.msra.mxu0 %v242_v0  ;;  %v238_v2 = vld [vmem:[#allocation5 + $0xd0] sm:$0xff]  ;;  %v236_v3 = vld [vmem:[#allocation5 + $0xc0] sm:$0xff]  ;;  %v243_v7 = vld [vmem:[#allocation5 + $0xf8] sm:$0xff]  ;;  %s668_s2 = sshll.u32 %s1007_s30, 4  ;;  %s1231_s20 = sld [smem:[#allocation32_spill]]  ;;  %s669_s2 = int_to_ptr.vmem [resolvable:$true] %s668_s2 }
  0x3d   :  { %v306_v4 = vld [vmem:[#allocation8 + $0x78] sm:$0xff]  ;;  %v234_v5 = vld [vmem:[#allocation5 + $0xb0] sm:$0xff]  ;;  %270 = vmatpush.msra.mxu1 %v243_v7  ;;  %v241_v9 = vld [vmem:[#allocation5 + $0xe8] sm:$0xff] }
  0x3e   :  { %251 = vmatpush.msra.mxu0 %v240_v1  ;;  %311 = vmatpush.msra.mxu2 %v306_v4  ;;  %v305_v6 = vld [vmem:[#allocation8 + $0x70] sm:$0xff]  ;;  %v304_v8 = vld [vmem:[#allocation8 + $0x68] sm:$0xff]  ;;  %v232_v10 = vld [vmem:[#allocation5 + $0xa0] sm:$0xff] }
  0x3f   :  { %v239_v11 = vld [vmem:[#allocation5 + $0xd8] sm:$0xff]  ;;  %v303_v12 = vld [vmem:[#allocation8 + $0x60] sm:$0xff]  ;;  %271 = vmatpush.msra.mxu1 %v241_v9  ;;  %v230_v13 = vld [vmem:[#allocation5 + $0x90] sm:$0xff] }
  0x40   :  { %252 = vmatpush.msra.mxu0 %v238_v2  ;;  %312 = vmatpush.msra.mxu2 %v305_v6  ;;  %v237_v14 = vld [vmem:[#allocation5 + $0xc8] sm:$0xff]  ;;  %v228_v15 = vld [vmem:[#allocation5 + $0x80] sm:$0xff]  ;;  %v226_v17 = vld [vmem:[#allocation5 + $0x70] sm:$0xff] }
  0x41   :  { %v302_v16 = vld [vmem:[#allocation8 + $0x58] sm:$0xff]  ;;  %272 = vmatpush.msra.mxu1 %v239_v11  ;;  %v301_v18 = vld [vmem:[#allocation8 + $0x50] sm:$0xff]  ;;  %v300_v20 = vld [vmem:[#allocation8 + $0x48] sm:$0xff] }
  0x42   :  { %253 = vmatpush.msra.mxu0 %v236_v3  ;;  %313 = vmatpush.msra.mxu2 %v304_v8  ;;  %v235_v19 = vld [vmem:[#allocation5 + $0xb8] sm:$0xff]  ;;  %v233_v21 = vld [vmem:[#allocation5 + $0xa8] sm:$0xff]  ;;  %v224_v22 = vld [vmem:[#allocation5 + $0x60] sm:$0xff]  ;;  %s670_s1 = sshll.u32 %s1231_s20, 4  ;;  %s671_s1 = int_to_ptr.hbm [resolvable:$true] %s670_s1 }
  0x43   :  { %273 = vmatpush.msra.mxu1 %v237_v14  ;;  %v231_v23 = vld [vmem:[#allocation5 + $0x98] sm:$0xff]  ;;  %v299_v24 = vld [vmem:[#allocation8 + $0x40] sm:$0xff]  ;;  %v222_v25 = vld [vmem:[#allocation5 + $0x50] sm:$0xff] }
  0x44   :  { %254 = vmatpush.msra.mxu0 %v234_v5  ;;  %314 = vmatpush.msra.mxu2 %v303_v12  ;;  %v229_v26 = vld [vmem:[#allocation5 + $0x88] sm:$0xff]  ;;  %v298_v27 = vld [vmem:[#allocation8 + $0x38] sm:$0xff]  ;;  %v297_v30 = vld [vmem:[#allocation8 + $0x30] sm:$0xff] }
  0x45   :  { %274 = vmatpush.msra.mxu1 %v235_v19  ;;  %v220_v28 = vld [vmem:[#allocation5 + $0x40] sm:$0xff]  ;;  %v227_v29 = vld [vmem:[#allocation5 + $0x78] sm:$0xff]  ;;  %v218_v31 = vld [vmem:[#allocation5 + $0x30] sm:$0xff] }
  0x46   :  { %255 = vmatpush.msra.mxu0 %v232_v10  ;;  %315 = vmatpush.msra.mxu2 %v302_v16  ;;  %v225_v32 = vld [vmem:[#allocation5 + $0x68] sm:$0xff]  ;;  %v216_v34 = vld [vmem:[#allocation5 + $0x20] sm:$0xff]  ;;  %v214_v36 = vld [vmem:[#allocation5 + $0x10] sm:$0xff] }
  0x47   :  { %275 = vmatpush.msra.mxu1 %v233_v21  ;;  %v296_v33 = vld [vmem:[#allocation8 + $0x28] sm:$0xff]  ;;  %v295_v35 = vld [vmem:[#allocation8 + $0x20] sm:$0xff]  ;;  %v294_v37 = vld [vmem:[#allocation8 + $0x18] sm:$0xff] }
  0x48   :  { %256 = vmatpush.msra.mxu0 %v230_v13  ;;  %316 = vmatpush.msra.mxu2 %v301_v18  ;;  %v212_v38 = vld [vmem:[#allocation5] sm:$0xff]  ;;  %v211_v39 = vld [vmem:[#allocation2] sm:$0xff]  ;;  %v221_v42 = vld [vmem:[#allocation5 + $0x48] sm:$0xff] }
  0x49   :  { %276 = vmatpush.msra.mxu1 %v231_v23  ;;  %v223_v40 = vld [vmem:[#allocation5 + $0x58] sm:$0xff]  ;;  %v292_v43 = vld [vmem:[#allocation8 + $0x8] sm:$0xff]  ;;  %v291_v45 = vld [vmem:[#allocation8] sm:$0xff] }
  0x4a   :  { %257 = vmatpush.msra.mxu0 %v228_v15  ;;  %317 = vmatpush.msra.mxu2 %v300_v20  ;;  %v293_v41 = vld [vmem:[#allocation8 + $0x10] sm:$0xff]  ;;  %v217_v46 = vld [vmem:[#allocation5 + $0x28] sm:$0xff]  ;;  %v244_v49 = vld [vmem:[#allocation7] sm:$0x3] }
  0x4b   :  { %277 = vmatpush.msra.mxu1 %v229_v26  ;;  %v219_v44 = vld [vmem:[#allocation5 + $0x38] sm:$0xff]  ;;  %v213_v48 = vld [vmem:[#allocation5 + $0x8] sm:$0xff]  ;;  %v246_v50 = vperm.slane %v244_v49, 0  ;;  %v247_v54 = vperm.slane %v244_v49, 1  ;;  %v700_v56 = vld [vmem:[#allocation10] ss:$0 sm:$0xff] }
  0x4c   :  { %258 = vmatpush.msra.mxu0 %v226_v17  ;;  %318 = vmatpush.msra.mxu2 %v299_v24  ;;  %v215_v47 = vld [vmem:[#allocation5 + $0x18] sm:$0xff]  ;;  %v390_v63 = vld [vmem:[#allocation13 + $0xe0] sm:$0xff]  ;;  %v391_v0 = vld [vmem:[#allocation13 + $0xe8] sm:$0xff] }
  0x4d   :  { %278 = vmatpush.msra.mxu1 %v227_v29  ;;  %v392_v61 = vld [vmem:[#allocation13 + $0xf0] sm:$0xff]  ;;  %v393_v62 = vld [vmem:[#allocation13 + $0xf8] sm:$0xff]  ;;  %v386_v7 = vld [vmem:[#allocation13 + $0xc0] sm:$0xff] }
  0x4e   :  { %259 = vmatpush.msra.mxu0 %v224_v22  ;;  %319 = vmatpush.msra.mxu2 %v298_v27  ;;  %v388_v5 = vld [vmem:[#allocation13 + $0xd0] sm:$0xff]  ;;  %v389_v6 = vld [vmem:[#allocation13 + $0xd8] sm:$0xff]  ;;  %v387_v8 = vld [vmem:[#allocation13 + $0xc8] sm:$0xff] }
  0x4f   :  { %279 = vmatpush.msra.mxu1 %v225_v32  ;;  %400 = vmatpush.msra.mxu3 %v392_v61  ;;  %v384_v9 = vld [vmem:[#allocation13 + $0xb0] sm:$0xff]  ;;  %v385_v10 = vld [vmem:[#allocation13 + $0xb8] sm:$0xff]  ;;  %v382_v11 = vld [vmem:[#allocation13 + $0xa0] sm:$0xff] }
  0x50   :  { %260 = vmatpush.msra.mxu0 %v222_v25  ;;  %320 = vmatpush.msra.mxu2 %v297_v30  ;;  %v383_v12 = vld [vmem:[#allocation13 + $0xa8] sm:$0xff]  ;;  %v380_v13 = vld [vmem:[#allocation13 + $0x90] sm:$0xff]  ;;  %v381_v14 = vld [vmem:[#allocation13 + $0x98] sm:$0xff] }
  0x51   :  { %280 = vmatpush.msra.mxu1 %v223_v40  ;;  %401 = vmatpush.msra.mxu3 %v390_v63  ;;  %v378_v15 = vld [vmem:[#allocation13 + $0x80] sm:$0xff]  ;;  %v379_v16 = vld [vmem:[#allocation13 + $0x88] sm:$0xff]  ;;  %v376_v17 = vld [vmem:[#allocation13 + $0x70] sm:$0xff] }
  0x52   :  { %261 = vmatpush.msra.mxu0 %v220_v28  ;;  %321 = vmatpush.msra.mxu2 %v296_v33  ;;  %v377_v18 = vld [vmem:[#allocation13 + $0x78] sm:$0xff]  ;;  %v374_v19 = vld [vmem:[#allocation13 + $0x60] sm:$0xff]  ;;  %v375_v20 = vld [vmem:[#allocation13 + $0x68] sm:$0xff] }
  0x53   :  { %281 = vmatpush.msra.mxu1 %v221_v42  ;;  %402 = vmatpush.msra.mxu3 %v388_v5  ;;  %v372_v21 = vld [vmem:[#allocation13 + $0x50] sm:$0xff]  ;;  %v373_v22 = vld [vmem:[#allocation13 + $0x58] sm:$0xff]  ;;  %v370_v23 = vld [vmem:[#allocation13 + $0x40] sm:$0xff] }
  0x54   :  { %262 = vmatpush.msra.mxu0 %v218_v31  ;;  %322 = vmatpush.msra.mxu2 %v295_v35  ;;  %v371_v24 = vld [vmem:[#allocation13 + $0x48] sm:$0xff]  ;;  %v368_v25 = vld [vmem:[#allocation13 + $0x30] sm:$0xff]  ;;  %v369_v26 = vld [vmem:[#allocation13 + $0x38] sm:$0xff] }
  0x55   :  { %282 = vmatpush.msra.mxu1 %v219_v44  ;;  %403 = vmatpush.msra.mxu3 %v386_v7  ;;  %v366_v27 = vld [vmem:[#allocation13 + $0x20] sm:$0xff]  ;;  %v367_v28 = vld [vmem:[#allocation13 + $0x28] sm:$0xff]  ;;  %v364_v29 = vld [vmem:[#allocation13 + $0x10] sm:$0xff] }
  0x56   :  { %263 = vmatpush.msra.mxu0 %v216_v34  ;;  %323 = vmatpush.msra.mxu2 %v294_v37  ;;  %v365_v30 = vld [vmem:[#allocation13 + $0x18] sm:$0xff]  ;;  %v362_v31 = vld [vmem:[#allocation13] sm:$0xff]  ;;  %v363_v32 = vld [vmem:[#allocation13 + $0x8] sm:$0xff] }
  0x57   :  { %283 = vmatpush.msra.mxu1 %v217_v46  ;;  %404 = vmatpush.msra.mxu3 %v384_v9  ;;  %v456_v33 = vld [vmem:[#allocation14 + $0x78] sm:$0xff]  ;;  %v455_v34 = vld [vmem:[#allocation14 + $0x70] sm:$0xff]  ;;  %v454_v35 = vld [vmem:[#allocation14 + $0x68] sm:$0xff] }
  0x58   :  { %264 = vmatpush.msra.mxu0 %v214_v36  ;;  %324 = vmatpush.msra.mxu2 %v293_v41  ;;  %v452_v40 = vld [vmem:[#allocation14 + $0x58] sm:$0xff]  ;;  %v451_v41 = vld [vmem:[#allocation14 + $0x50] sm:$0xff]  ;;  %v450_v42 = vld [vmem:[#allocation14 + $0x48] sm:$0xff] }
  0x59   :  { %284 = vmatpush.msra.mxu1 %v215_v47  ;;  %405 = vmatpush.msra.mxu3 %v382_v11  ;;  %v447_v47 = vld [vmem:[#allocation14 + $0x30] sm:$0xff]  ;;  %v441_v63 = vld [vmem:[#allocation14] sm:$0xff] }
  0x5a   :  { %265 = vmatpush.msra.mxu0 %v212_v38  ;;  %325 = vmatpush.msra.mxu2 %v292_v43  ;;  %v453_v38 = vld [vmem:[#allocation14 + $0x60] sm:$0xff]  ;;  %v443_v61 = vld [vmem:[#allocation14 + $0x10] sm:$0xff] }
  0x5b   :  { %266 = vmatmul.f32.vlgmr.msra.gmra.mxu0 %v211_v39  ;;  %285 = vmatpush.msra.mxu1 %v213_v48  ;;  %v449_v43 = vld [vmem:[#allocation14 + $0x40] sm:$0xff] }
  0x5c   :  { %326 = vmatpush.msra.mxu2 %v291_v45  ;;  %286 = vmatmul.f32.vlgmr.msra.gmra.mxu1 %v211_v39  ;;  %v448_v45 = vld [vmem:[#allocation14 + $0x38] sm:$0xff] }
  0x5d   :  { %420 = vmatpush.msrb.mxu0 %v393_v62  ;;  %406 = vmatpush.msra.mxu3 %v380_v13  ;;  %v442_v62 = vld [vmem:[#allocation14 + $0x8] sm:$0xff]  ;;  %v543_v13 = vld [vmem:[#allocation16 + $0xf8] sm:$0xff] }
  0x5e   :  { %461 = vmatpush.msrb.mxu1 %v456_v33  ;;  %v527_v33 = vld [vmem:[#allocation16 + $0x78] sm:$0xff] }
  0x5f   :  { %421 = vmatpush.msrb.mxu0 %v391_v0  ;;  %407 = vmatpush.msra.mxu3 %v378_v15  ;;  %v394_v0 = vld [vmem:[%s1202_s8] sm:$0x3]  ;;  %v541_v15 = vld [vmem:[#allocation16 + $0xe8] sm:$0xff] }
  0x60   :  { %462 = vmatpush.msrb.mxu1 %v455_v34  ;;  %v397_v5 = vperm.slane %v394_v0, 1  ;;  %v524_v34 = vld [vmem:[#allocation16 + $0x60] sm:$0xff] }
  0x61   :  { %422 = vmatpush.msrb.mxu0 %v389_v6  ;;  %408 = vmatpush.msra.mxu3 %v376_v17  ;;  %v703_v6 = vld [vmem:[%s1204_s10] ss:$0 sm:$0xff] }
  0x62   :  { %463 = vmatpush.msrb.mxu1 %v454_v35  ;;  %v525_v35 = vld [vmem:[#allocation16 + $0x68] sm:$0xff] }
  0x63   :  { %423 = vmatpush.msrb.mxu0 %v387_v8  ;;  %409 = vmatpush.msra.mxu3 %v374_v19 }
  0x64   :  { %464 = vmatpush.msrb.mxu1 %v453_v38  ;;  %v520_v38 = vld [vmem:[#allocation16 + $0x40] sm:$0xff] }
  0x65   :  { %424 = vmatpush.msrb.mxu0 %v385_v10  ;;  %410 = vmatpush.msra.mxu3 %v372_v21  ;;  %v539_v21 = vld [vmem:[#allocation16 + $0xd8] sm:$0xff] }
  0x66   :  { %465 = vmatpush.msrb.mxu1 %v452_v40  ;;  %v518_v40 = vld [vmem:[#allocation16 + $0x30] sm:$0xff] }
  0x67   :  { %425 = vmatpush.msrb.mxu0 %v383_v12  ;;  %411 = vmatpush.msra.mxu3 %v370_v23  ;;  %v542_v12 = vld [vmem:[#allocation16 + $0xf0] sm:$0xff]  ;;  %v537_v23 = vld [vmem:[#allocation16 + $0xc8] sm:$0xff] }
  0x68   :  { %466 = vmatpush.msrb.mxu1 %v451_v41  ;;  %550 = vmatpush.msrb.mxu2 %v542_v12  ;;  %v519_v41 = vld [vmem:[#allocation16 + $0x38] sm:$0xff]  ;;  %v593_v12 = vld [vmem:[#allocation17 + $0x10] sm:$0xff] }
  0x69   :  { %426 = vmatpush.msrb.mxu0 %v381_v14  ;;  %412 = vmatpush.msra.mxu3 %v368_v25  ;;  %v540_v14 = vld [vmem:[#allocation16 + $0xe0] sm:$0xff]  ;;  %v535_v25 = vld [vmem:[#allocation16 + $0xb8] sm:$0xff] }
  0x6a   :  { %467 = vmatpush.msrb.mxu1 %v450_v42  ;;  %551 = vmatpush.msrb.mxu2 %v540_v14  ;;  %v516_v42 = vld [vmem:[#allocation16 + $0x20] sm:$0xff] }
  0x6b   :  { %427 = vmatpush.msrb.mxu0 %v379_v16  ;;  %413 = vmatpush.msra.mxu3 %v366_v27  ;;  %v533_v27 = vld [vmem:[#allocation16 + $0xa8] sm:$0xff]  ;;  %v591_v14 = vld [vmem:[#allocation17] sm:$0xff] }
  0x6c   :  { %468 = vmatpush.msrb.mxu1 %v449_v43  ;;  %v517_v43 = vld [vmem:[#allocation16 + $0x28] sm:$0xff] }
  0x6d   :  { %428 = vmatpush.msrb.mxu0 %v377_v18  ;;  %414 = vmatpush.msra.mxu3 %v364_v29  ;;  %v531_v29 = vld [vmem:[#allocation16 + $0x98] sm:$0xff] }
  0x6e   :  { %469 = vmatpush.msrb.mxu1 %v448_v45  ;;  %v515_v45 = vld [vmem:[#allocation16 + $0x18] sm:$0xff] }
  0x6f   :  { %429 = vmatpush.msrb.mxu0 %v375_v20  ;;  %415 = vmatpush.msra.mxu3 %v362_v31  ;;  %v538_v20 = vld [vmem:[#allocation16 + $0xd0] sm:$0xff]  ;;  %v529_v31 = vld [vmem:[#allocation16 + $0x88] sm:$0xff] }
  0x70   :  { %470 = vmatpush.msrb.mxu1 %v447_v47  ;;  %552 = vmatpush.msrb.mxu2 %v538_v20  ;;  %v513_v47 = vld [vmem:[#allocation16 + $0x8] sm:$0xff] }
  0x71   :  { %430 = vmatpush.msrb.mxu0 %v373_v22  ;;  %570 = vmatpush.msrb.mxu3 %v543_v13  ;;  %v536_v22 = vld [vmem:[#allocation16 + $0xc0] sm:$0xff]  ;;  %v592_v13 = vld [vmem:[#allocation17 + $0x8] sm:$0xff] }
  0x72   :  { %553 = vmatpush.msrb.mxu2 %v536_v22 }
  0x73   :  { %431 = vmatpush.msrb.mxu0 %v371_v24  ;;  %571 = vmatpush.msrb.mxu3 %v541_v15  ;;  %v534_v24 = vld [vmem:[#allocation16 + $0xb0] sm:$0xff] }
  0x74   :  { %554 = vmatpush.msrb.mxu2 %v534_v24  ;;  %v544_v15 = vld [vmem:[%s1208_s14] sm:$0x3] }
  0x75   :  { %432 = vmatpush.msrb.mxu0 %v369_v26  ;;  %572 = vmatpush.msrb.mxu3 %v539_v21  ;;  %v532_v26 = vld [vmem:[#allocation16 + $0xa0] sm:$0xff]  ;;  %v547_v20 = vperm.slane %v544_v15, 1  ;;  %v706_v21 = vld [vmem:[%s1210_s16] ss:$0 sm:$0xff] }
  0x76   :  { %555 = vmatpush.msrb.mxu2 %v532_v26 }
  0x77   :  { %433 = vmatpush.msrb.mxu0 %v367_v28  ;;  %573 = vmatpush.msrb.mxu3 %v537_v23  ;;  %v530_v28 = vld [vmem:[#allocation16 + $0x90] sm:$0xff] }
  0x78   :  { %556 = vmatpush.msrb.mxu2 %v530_v28 }
  0x79   :  { %434 = vmatpush.msrb.mxu0 %v365_v30  ;;  %574 = vmatpush.msrb.mxu3 %v535_v25  ;;  %v528_v30 = vld [vmem:[#allocation16 + $0x80] sm:$0xff] }
  0x7a   :  { %557 = vmatpush.msrb.mxu2 %v528_v30 }
  0x7b   :  { %435 = vmatpush.msrb.mxu0 %v363_v32  ;;  %575 = vmatpush.msrb.mxu3 %v533_v27  ;;  %v526_v32 = vld [vmem:[#allocation16 + $0x70] sm:$0xff] }
  0x7c   :  { %558 = vmatpush.msrb.mxu2 %v526_v32 }
  0x7d   :  { %576 = vmatpush.msrb.mxu3 %v531_v29 }
  0x7e   :  { %559 = vmatpush.msrb.mxu2 %v524_v34 }
  0x7f   :  { %577 = vmatpush.msrb.mxu3 %v529_v31 }
  0x81   :  { %578 = vmatpush.msrb.mxu3 %v527_v33 }
  0x83   :  { %579 = vmatpush.msrb.mxu3 %v525_v35 }
  0xd8   :  { %v267_v51 = vpop.f32.mrf.mxu0 }
  0xd9   :  { %v268_v52 = vadd.f32 %v267_v51, %v246_v50  ;;  %v287_v55 = vpop.f32.mrf.mxu1 }
  0xda   :  { %v288_v57 = vadd.f32 %v287_v55, %v247_v54  ;;  %v702_v55 = vld [vmem:[%s1200_s6] ss:$0 sm:$0xff] }
  0xdb   :  { %v290_v53 = vmax.f32 %v268_v52, 0.0  ;;  %v701_v52 = vld [vmem:[#allocation11] ss:$0 sm:$0xff] }
  0xdd   :  { %327 = vmatmul.f32.vlgmr.msra.gmra.mxu2 %v290_v53 }
 0x160   :  { %v328_v58 = vpop.f32.mrf.mxu2 }
 0x161   :  { %v329_v59 = vadd.f32 %v700_v56, %v328_v58  ;;  %v446_v58 = vld [vmem:[#allocation14 + $0x28] sm:$0xff] }
 0x162   :  { %471 = vmatpush.msrb.mxu1 %v446_v58  ;;  %v599_v58 = vld [vmem:[#allocation17 + $0x40] sm:$0xff] }
 0x163   :  { %v331_v60 = vadd.f32 %v329_v59, %v288_v57  ;;  %v445_v59 = vld [vmem:[#allocation14 + $0x20] sm:$0xff] }
 0x164   :  { %472 = vmatpush.msrb.mxu1 %v445_v59 }
 0x165   :  { %332 = vadd.xlane.f32.xlu0 %v331_v60 }
 0x1d8   :  { %v333_v1 = vpop.xlane.xlu0 %332 }
 0x1d9   :  { %v334_v2 = vmul.f32 0.03125, %v333_v1  ;;  %v396_v1 = vperm.slane %v394_v0, 0  ;;  %v596_v0 = vld [vmem:[#allocation17 + $0x28] sm:$0xff] }
 0x1db   :  { %v1156_v3 = vsub.f32 %v331_v60, %v334_v2 }
 0x1dd   :  { %v336_v4 = vmul.f32 %v1156_v3, %v331_v60  ;;  %v444_v60 = vld [vmem:[#allocation14 + $0x18] sm:$0xff] }
 0x1de   :  { %473 = vmatpush.msrb.mxu1 %v444_v60  ;;  %v598_v60 = vld [vmem:[#allocation17 + $0x38] sm:$0xff] }
 0x1df   :  { %337 = vadd.xlane.f32.xlu0 %v336_v4 }
 0x1e0   :  { %474 = vmatpush.msrb.mxu1 %v443_v61 }
 0x1e2   :  { %475 = vmatpush.msrb.mxu1 %v442_v62  ;;  %v597_v62 = vld [vmem:[#allocation17 + $0x30] sm:$0xff] }
 0x1e4   :  { %476 = vmatpush.msrb.mxu1 %v441_v63 }
 0x252   :  { %v338_v36 = vpop.xlane.xlu0 %337 }
 0x253   :  { %v339_v37 = vmul.f32 0.03125, %v338_v36  ;;  %v522_v36 = vld [vmem:[#allocation16 + $0x50] sm:$0xff] }
 0x254   :  { %560 = vmatpush.msrb.mxu2 %v522_v36 }
 0x255   :  { %v340_v39 = vadd.f32 1e-05, %v339_v37  ;;  %v523_v37 = vld [vmem:[#allocation16 + $0x58] sm:$0xff] }
 0x256   :  { %580 = vmatpush.msrb.mxu3 %v523_v37  ;;  %561 = vmatpush.msrb.mxu2 %v520_v38 }
 0x257   :  { %709 = vrsqrt.f32 %v340_v39  ;;  %vm347_vm1 = vweird.f32 %v340_v39 }
 0x258   :  { %562 = vmatpush.msrb.mxu2 %v518_v40  ;;  %v707_v40 = vld [vmem:[%s1211_s17] ss:$0 sm:$0xff] }
 0x25a   :  { %563 = vmatpush.msrb.mxu2 %v516_v42 }
 0x25d   :  { %v710_v44 = vpop.eup %709 }
 0x25e   :  { %v342_v46 = vmul.f32 %v710_v44, %v340_v39  ;;  %vm348_vm0 = vweird.f32 %v710_v44  ;;  %v521_v39 = vld [vmem:[#allocation16 + $0x48] sm:$0xff] }
 0x25f   :  { %vm349_vm2 = vmor %vm347_vm1, %vm348_vm0  ;;  %581 = vmatpush.msrb.mxu3 %v521_v39 }
 0x260   :  { %v343_v48 = vmul.f32 %v710_v44, %v342_v46  ;;  %v512_v46 = vld [vmem:[#allocation16] sm:$0xff] }
 0x261   :  { %582 = vmatpush.msrb.mxu3 %v519_v41 }
 0x262   :  { %v344_v49 = vmul.f32 0.5, %v343_v48  ;;  %v606_v48 = vld [vmem:[#allocation17 + $0x78] sm:$0xff] }
 0x263   :  { %583 = vmatpush.msrb.mxu3 %v517_v43  ;;  %611 = vmatpush.msra.mxu0 %v606_v48  ;;  %v708_v43 = vld [vmem:[%s1230_s28] ss:$0 sm:$0xff] }
 0x264   :  { %v345_v50 = vsub.f32 1.5, %v344_v49  ;;  %v605_v49 = vld [vmem:[#allocation17 + $0x70] sm:$0xff] }
 0x265   :  { %584 = vmatpush.msrb.mxu3 %v515_v45  ;;  %612 = vmatpush.msra.mxu0 %v605_v49 }
 0x266   :  { %v346_v51 = vmul.f32 %v710_v44, %v345_v50  ;;  %v604_v50 = vld [vmem:[#allocation17 + $0x68] sm:$0xff] }
 0x267   :  { %585 = vmatpush.msrb.mxu3 %v513_v47  ;;  %613 = vmatpush.msra.mxu0 %v604_v50 }
 0x268   :  { %v350_v53 = vsel %vm349_vm2, %v710_v44, %v346_v51  ;;  %v514_v44 = vld [vmem:[#allocation16 + $0x10] sm:$0xff] }
 0x269   :  { %v351_v54 = vmul.f32 %v350_v53, %v1156_v3  ;;  %564 = vmatpush.msrb.mxu2 %v514_v44  ;;  %v603_v53 = vld [vmem:[#allocation17 + $0x60] sm:$0xff] }
 0x26a   :  { %614 = vmatpush.msra.mxu0 %v603_v53 }
 0x26b   :  { %v356_v56 = vmul.f32 %v701_v52, %v351_v54  ;;  %565 = vmatpush.msrb.mxu2 %v512_v46 }
 0x26d   :  { %v361_v57 = vadd.f32 %v702_v55, %v356_v56  ;;  %v602_v55 = vld [vmem:[#allocation17 + $0x58] sm:$0xff]  ;;  %v601_v56 = vld [vmem:[#allocation17 + $0x50] sm:$0xff] }
 0x26e   :  { %615 = vmatpush.msra.mxu0 %v602_v55 }
 0x26f   :  { %416 = vmatmul.f32.vlgmr.msra.gmra.mxu3 %v361_v57  ;;  %436 = vmatmul.f32.vlgmr.msrb.gmra.mxu0 %v361_v57  ;;  %v600_v57 = vld [vmem:[#allocation17 + $0x48] sm:$0xff] }
 0x270   :  { %616 = vmatpush.msra.mxu0 %v601_v56 }
 0x272   :  { %617 = vmatpush.msra.mxu0 %v600_v57 }
 0x274   :  { %618 = vmatpush.msra.mxu0 %v599_v58 }
 0x276   :  { %619 = vmatpush.msra.mxu0 %v598_v60 }
 0x278   :  { %620 = vmatpush.msra.mxu0 %v597_v62 }
 0x27a   :  { %621 = vmatpush.msra.mxu0 %v596_v0 }
 0x2ec   :  { %v437_v7 = vpop.f32.mrf.mxu0 }
 0x2ed   :  { %v438_v9 = vadd.f32 %v437_v7, %v397_v5 }
 0x2f2   :  { %v417_v2 = vpop.f32.mrf.mxu3 }
 0x2f3   :  { %v418_v3 = vadd.f32 %v417_v2, %v396_v1  ;;  %v595_v2 = vld [vmem:[#allocation17 + $0x20] sm:$0xff] }
 0x2f4   :  { %622 = vmatpush.msra.mxu0 %v595_v2 }
 0x2f5   :  { %v440_v4 = vmax.f32 %v418_v3, 0.0 }
 0x2f7   :  { %477 = vmatmul.f32.vlgmr.msrb.gmra.mxu1 %v440_v4  ;;  %v594_v4 = vld [vmem:[#allocation17 + $0x18] sm:$0xff] }
 0x2f8   :  { %623 = vmatpush.msra.mxu0 %v594_v4 }
 0x2fa   :  { %624 = vmatpush.msra.mxu0 %v593_v12 }
 0x2fc   :  { %625 = vmatpush.msra.mxu0 %v592_v13 }
 0x2fe   :  { %626 = vmatpush.msra.mxu0 %v591_v14 }
 0x374   :  { %v478_v8 = vpop.f32.mrf.mxu1 }
 0x375   :  { %v479_v10 = vadd.f32 %v703_v6, %v478_v8  ;;  %v704_v6 = vld [vmem:[%s1205_s11] ss:$0 sm:$0xff] }
 0x377   :  { %v481_v11 = vadd.f32 %v479_v10, %v438_v9  ;;  %v705_v9 = vld [vmem:[%s1206_s12] ss:$0 sm:$0xff] }
 0x379   :  { %482 = vadd.xlane.f32.xlu1 %v481_v11 }
 0x3ec   :  { %v483_v16 = vpop.xlane.xlu1 %482 }
 0x3ed   :  { %v484_v17 = vmul.f32 0.03125, %v483_v16  ;;  %v546_v16 = vperm.slane %v544_v15, 0 }
 0x3ef   :  { %v1169_v18 = vsub.f32 %v481_v11, %v484_v17 }
 0x3f1   :  { %v486_v19 = vmul.f32 %v1169_v18, %v481_v11 }
 0x3f3   :  { %487 = vadd.xlane.f32.xlu1 %v486_v19 }
 0x466   :  { %v488_v51 = vpop.xlane.xlu1 %487 }
 0x467   :  { %v489_v52 = vmul.f32 0.03125, %v488_v51 }
 0x469   :  { %v490_v54 = vadd.f32 1e-05, %v489_v52 }
 0x46b   :  { %711 = vrsqrt.f32 %v490_v54  ;;  %vm497_vm4 = vweird.f32 %v490_v54 }
 0x471   :  { %v712_v59 = vpop.eup %711 }
 0x472   :  { %v492_v61 = vmul.f32 %v712_v59, %v490_v54  ;;  %vm498_vm3 = vweird.f32 %v712_v59 }
 0x473   :  { %vm499_vm5 = vmor %vm497_vm4, %vm498_vm3 }
 0x474   :  { %v493_v63 = vmul.f32 %v712_v59, %v492_v61 }
 0x476   :  { %v494_v1 = vmul.f32 0.5, %v493_v63 }
 0x478   :  { %v495_v3 = vsub.f32 1.5, %v494_v1 }
 0x47a   :  { %v496_v5 = vmul.f32 %v712_v59, %v495_v3 }
 0x47c   :  { %v500_v7 = vsel %vm499_vm5, %v712_v59, %v496_v5 }
 0x47d   :  { %v501_v8 = vmul.f32 %v500_v7, %v1169_v18 }
 0x47f   :  { %v506_v10 = vmul.f32 %v704_v6, %v501_v8 }
 0x481   :  { %v511_v11 = vadd.f32 %v705_v9, %v506_v10 }
 0x483   :  { %566 = vmatmul.f32.vlgmr.msrb.gmra.mxu2 %v511_v11  ;;  %586 = vmatmul.f32.vlgmr.msrb.gmra.mxu3 %v511_v11 }
 0x506   :  { %v567_v17 = vpop.f32.mrf.mxu2  ;;  %v587_v22 = vpop.f32.mrf.mxu3 }
 0x507   :  { %v568_v18 = vadd.f32 %v567_v17, %v546_v16  ;;  %v588_v24 = vadd.f32 %v587_v22, %v547_v20 }
 0x509   :  { %v590_v19 = vmax.f32 %v568_v18, 0.0 }
 0x50b   :  { %627 = vmatmul.f32.vlgmr.msra.gmra.mxu0 %v590_v19 }
 0x588   :  { %v628_v23 = vpop.f32.mrf.mxu0 }
 0x589   :  { %v629_v25 = vadd.f32 %v706_v21, %v628_v23 }
 0x58b   :  { %v631_v26 = vadd.f32 %v629_v25, %v588_v24 }
 0x58d   :  { %632 = vadd.xlane.f32.xlu2 %v631_v26 }
 0x600   :  { %v633_v27 = vpop.xlane.xlu2 %632 }
 0x601   :  { %v634_v28 = vmul.f32 0.041666668, %v633_v27 }
 0x603   :  { %v635_v29 = vsub.f32 %v631_v26, %v634_v28 }
 0x605   :  { %v636_v30 = vmul.f32 %v635_v29, %v631_v26 }
 0x607   :  { %637 = vadd.xlane.f32.xlu2 %v636_v30 }
 0x67a   :  { %v638_v31 = vpop.xlane.xlu2 %637 }
 0x67b   :  { %v639_v32 = vmul.f32 0.041666668, %v638_v31 }
 0x67d   :  { %v640_v33 = vadd.f32 1e-05, %v639_v32 }
 0x67f   :  { %713 = vrsqrt.f32 %v640_v33  ;;  %vm647_vm7 = vweird.f32 %v640_v33 }
 0x685   :  { %v714_v34 = vpop.eup %713 }
 0x686   :  { %v642_v35 = vmul.f32 %v714_v34, %v640_v33  ;;  %vm648_vm6 = vweird.f32 %v714_v34 }
 0x687   :  { %vm649_vm8 = vmor %vm647_vm7, %vm648_vm6 }
 0x688   :  { %v643_v36 = vmul.f32 %v714_v34, %v642_v35 }
 0x68a   :  { %v644_v37 = vmul.f32 0.5, %v643_v36 }
 0x68c   :  { %v645_v38 = vsub.f32 1.5, %v644_v37 }
 0x68e   :  { %v646_v39 = vmul.f32 %v714_v34, %v645_v38 }
 0x690   :  { %v650_v41 = vsel %vm649_vm8, %v714_v34, %v646_v39 }
 0x691   :  { %v651_v42 = vmul.f32 %v650_v41, %v635_v29 }
 0x693   :  { %v656_v44 = vmul.f32 %v707_v40, %v651_v42 }
 0x695   :  { %v661_v45 = vadd.f32 %v708_v43, %v656_v44 }
 0x697   :  { %662 = vst [vmem:[#allocation19] sm:$0xff] %v661_v45 }
 0x698   :  { %673 = dma.vmem_to_hbm [thread:$0]  %s669_s2, 128, %s671_s1, [#allocation4]  }
 0x699   :  { %991 = dma.done.wait [#allocation4], 128  }
 0x69a   :  { %992 = vsyncadd [#allocation4], 4294967168 }
 0x69b   :  { %678 = vsyncpa [#allocation3], 1 }
 0x69c   :  { %679 = vsyncpa [#allocation6], 1 }
 0x69d   :  { %680 = vsyncpa [#allocation9], 1 }
 0x69e   :  { %681 = vsyncpa [#allocation12], 1 }
 0x69f   :  { %682 = vsyncpa [#allocation15], 1 }
 0x6a0   :  { %683 = vsyncpa [#allocation18], 1 }
 0x6a1   :  { %684 = vsyncpa [#allocation4], 1 }

</bundles_post_ra>
